<compile_context>
chip_gen: v5e
topology: v5e:2x2
jax: 0.10.0
libtpu: 0.0.40
codegen_flags: <defaults>
</compile_context>

<pallas_src>
import functools

import jax
import jax.numpy as jnp
import numpy as np
from jax import lax
from jax.experimental import pallas as pl
from jax.experimental.pallas import tpu as pltpu

_F32 = jnp.float32
_BF16 = jnp.bfloat16
_BN_EPS = 1e-5
_DIV_EPS = 1e-6


def _egc_body(node, edge, src_oh, dst_oh, dst_oh_t,
              wn_ref, bn_ref, we_ref, be_ref,
              gn_ref, btn_ref, ge_ref, bte_ref, fp):
    """One EdgeGatedGraphConv layer (residual=True); all operands in VMEM.

    node: (R, Fp) f32, edge: (Er, Fp) f32.
    src_oh/dst_oh: (Er, R) bf16 one-hot incidence; dst_oh_t: (R, Er) bf16
    (pre-transposed in the wrapper so the scatter runs in natural MXU
    orientation, no in-kernel XLU transpose).
    wn_ref: (Fp, 4*Fp) fused [src_gate | dst_update | dst_gate | src_update].
    """
    # One wide f32 MXU matmul for all four node-side linear layers.
    nf = jnp.dot(node, wn_ref[...], preferred_element_type=_F32) + bn_ref[...]
    e_edge = jnp.dot(edge, we_ref[...], preferred_element_type=_F32) + be_ref[...]

    # bf16 cast of only the columns the incidence matmuls consume.
    nf_bf = nf[:, :3 * fp].astype(_BF16)

    # Gathers as bf16 x bf16 -> f32 incidence matmuls:
    #   src_g = [e_src | Bh] at each edge's source node (one fused matmul),
    #   dst_g = e_dst at each edge's destination node.
    src_g = jnp.dot(src_oh, nf_bf[:, :2 * fp], preferred_element_type=_F32)   # (Er, 2Fp)
    dst_g = jnp.dot(dst_oh, nf_bf[:, 2 * fp:], preferred_element_type=_F32)   # (Er, Fp)

    m = src_g[:, :fp] + dst_g + e_edge                                        # (Er, Fp)
    bh_u = src_g[:, fp:]                                                      # Bh at src
    sigma = pl.reciprocal(1.0 + jnp.exp(-m), approx=True)                     # sigmoid (EUP)

    # Scatter-sums to destination nodes: two bf16 matmuls reusing the
    # pre-transposed incidence (no concatenate, no dot_general transpose).
    scat_sh = jnp.dot(dst_oh_t, (sigma * bh_u).astype(_BF16),
                      preferred_element_type=_F32)                            # (R, Fp)
    scat_s = jnp.dot(dst_oh_t, sigma.astype(_BF16),
                     preferred_element_type=_F32)                             # (R, Fp)
    h = scat_sh * pl.reciprocal(scat_s + _DIV_EPS, approx=True)

    x = nf[:, 3 * fp:] + h                                                    # src_update + h

    def batchnorm(v, gamma, beta):
        # BatchNorm1d, training mode, one-pass stats: var = E[v^2] - mu^2.
        r = 1.0 / v.shape[0]
        mu = jnp.sum(v, axis=0, keepdims=True) * r
        ex2 = jnp.sum(v * v, axis=0, keepdims=True) * r
        var = jnp.maximum(ex2 - mu * mu, 0.0)
        return (v - mu) * lax.rsqrt(var + _BN_EPS) * gamma + beta

    x = jnp.clip(batchnorm(x, gn_ref[...], btn_ref[...]), 0.0, 6.0)           # relu6
    y = jnp.clip(batchnorm(m, ge_ref[...], bte_ref[...]), 0.0, 6.0)           # relu6
    return node + x, edge + y                                                 # residual


def _alignn_kernel(x_ref, y_ref, z_ref,
                   gsrc_ref, gdst_ref, gdst_t_ref,
                   lsrc_ref, ldst_ref, ldst_t_ref,
                   wn1, bn1, we1, be1, gn1, btn1, ge1, bte1,
                   wn2, bn2, we2, be2, gn2, btn2, ge2, bte2,
                   x_out_ref, y_out_ref, z_out_ref, *, fp):
    x = x_ref[...]
    y = y_ref[...]
    z = z_ref[...]

    # Phase 1: node/edge update on g.
    x_new, m = _egc_body(x, y, gsrc_ref[...], gdst_ref[...], gdst_t_ref[...],
                         wn1, bn1, we1, be1, gn1, btn1, ge1, bte1, fp)
    # Phase 2: edge/triplet update on line graph lg (nodes of lg == edges of g).
    y_new, z_new = _egc_body(m, z, lsrc_ref[...], ldst_ref[...], ldst_t_ref[...],
                             wn2, bn2, we2, be2, gn2, btn2, ge2, bte2, fp)

    x_out_ref[...] = x_new
    y_out_ref[...] = y_new
    z_out_ref[...] = z_new


# ---------------------------------------------------------------------------
# Wrapper: padding / weight fusion / pallas_call
# ---------------------------------------------------------------------------
def _pad_cols(a, fp, value=0.0):
    return jnp.pad(a, ((0, 0), (0, fp - a.shape[1])), constant_values=value)


def _fuse_egc_params(p, fp):
    def pad_w(w):
        return jnp.pad(w, ((0, fp - w.shape[0]), (0, fp - w.shape[1])))

    # Column order [src_gate | dst_update | dst_gate | src_update] so the fused
    # source-gather operand [e_src | Bh] is a contiguous 128-aligned slice.
    w_node = jnp.concatenate([pad_w(p["wsg"]), pad_w(p["wdu"]),
                              pad_w(p["wdg"]), pad_w(p["wsu"])], axis=1)
    b_node = jnp.concatenate([_pad_cols(p["bsg"], fp), _pad_cols(p["bdu"], fp),
                              _pad_cols(p["bdg"], fp), _pad_cols(p["bsu"], fp)],
                             axis=1)
    w_edge = pad_w(p["weg"])
    b_edge = _pad_cols(p["beg"], fp)
    gam_n = _pad_cols(p["gam_n"], fp, 1.0)   # pad lanes: var=0 -> out = beta = 0
    bet_n = _pad_cols(p["bet_n"], fp, 0.0)
    gam_e = _pad_cols(p["gam_e"], fp, 1.0)
    bet_e = _pad_cols(p["bet_e"], fp, 0.0)
    return (w_node, b_node, w_edge, b_edge, gam_n, bet_n, gam_e, bet_e)


def alignn_conv(x, y, z, src_oh, dst_oh, lsrc_oh, ldst_oh,
                node_params, edge_params):
    """ALIGNNConv.forward: node/edge update on g, then edge/triplet on lg."""
    n, f = x.shape
    e = y.shape[0]
    e2 = z.shape[0]
    fp = max(128, ((f + 127) // 128) * 128)          # lane-dense feature dim

    x_p = _pad_cols(x.astype(_F32), fp)
    y_p = _pad_cols(y.astype(_F32), fp)
    z_p = _pad_cols(z.astype(_F32), fp)

    # bf16 0/1 incidence (exact); destination incidence also shipped
    # pre-transposed so the in-kernel scatter is a plain matmul.
    gsrc = src_oh.astype(_BF16)
    gdst = dst_oh.astype(_BF16)
    gdst_t = jnp.transpose(dst_oh).astype(_BF16)
    lsrc = lsrc_oh.astype(_BF16)
    ldst = ldst_oh.astype(_BF16)
    ldst_t = jnp.transpose(ldst_oh).astype(_BF16)

    p1 = _fuse_egc_params(node_params, fp)
    p2 = _fuse_egc_params(edge_params, fp)

    inputs = (x_p, y_p, z_p, gsrc, gdst, gdst_t, lsrc, ldst, ldst_t) + p1 + p2

    def full_spec(a):
        nd = a.ndim
        return pl.BlockSpec(a.shape, lambda i, _nd=nd: (0,) * _nd)

    out_shape = (jax.ShapeDtypeStruct((n, fp), _F32),
                 jax.ShapeDtypeStruct((e, fp), _F32),
                 jax.ShapeDtypeStruct((e2, fp), _F32))
    out_specs = (pl.BlockSpec((n, fp), lambda i: (0, 0)),
                 pl.BlockSpec((e, fp), lambda i: (0, 0)),
                 pl.BlockSpec((e2, fp), lambda i: (0, 0)))

    # TODO(synk): once the E/E2 dims are tiled, request single buffering
    # (pipeline_mode=pl.Buffered(...)) for grid-invariant weight inputs and
    # shrink vmem_limit_bytes per generation (v7x: 64 MiB physical).
    x_o, y_o, z_o = pl.pallas_call(
        functools.partial(_alignn_kernel, fp=fp),
        grid=(1,),
        in_specs=[full_spec(a) for a in inputs],
        out_specs=out_specs,
        out_shape=out_shape,
        input_output_aliases={0: 0, 1: 1, 2: 2},   # residual buffers reused
        compiler_params=pltpu.CompilerParams(
            dimension_semantics=("arbitrary",),
            vmem_limit_bytes=48 * 1024 * 1024),
    )(*inputs)

    return x_o[:, :f], y_o[:, :f], z_o[:, :f]


# ---------------------------------------------------------------------------
# Pure-JAX reference (module semantics) and test harness
# ---------------------------------------------------------------------------
def _egc_ref(node, edge, src, dst, p):
    def lin(v, w, b):
        return v @ w + b

    e_src = lin(node, p["wsg"], p["bsg"])
    e_dst = lin(node, p["wdg"], p["bdg"])
    m = e_src[src] + e_dst[dst] + lin(edge, p["weg"], p["beg"])
    sigma = jax.nn.sigmoid(m)
    bh = lin(node, p["wdu"], p["bdu"])
    ssh = jnp.zeros_like(node).at[dst].add(sigma * bh[src])
    ss = jnp.zeros_like(node).at[dst].add(sigma)
    h = ssh / (ss + 1e-6)
    x = lin(node, p["wsu"], p["bsu"]) + h

    def bn(v, g, b):
        mu = v.mean(0, keepdims=True)
        var = ((v - mu) ** 2).mean(0, keepdims=True)
        return (v - mu) * lax.rsqrt(var + _BN_EPS) * g + b

    x = jnp.clip(bn(x, p["gam_n"], p["bet_n"]), 0.0, 6.0)
    y = jnp.clip(bn(m, p["gam_e"], p["bet_e"]), 0.0, 6.0)
    return node + x, edge + y


def _alignn_ref(x, y, z, src, dst, lsrc, ldst, node_params, edge_params):
    x_new, m = _egc_ref(x, y, src, dst, node_params)
    y_new, z_new = _egc_ref(m, z, lsrc, ldst, edge_params)
    return x_new, y_new, z_new


def _make_egc_params(key, feat):
    ks = jax.random.split(key, 14)
    p = {}
    for i, name in enumerate(["sg", "dg", "eg", "su", "du"]):
        p["w" + name] = 0.1 * jax.random.normal(ks[2 * i], (feat, feat), _F32)
        p["b" + name] = 0.1 * jax.random.normal(ks[2 * i + 1], (1, feat), _F32)
    p["gam_n"] = 1.0 + 0.1 * jax.random.normal(ks[10], (1, feat), _F32)
    p["bet_n"] = 0.1 * jax.random.normal(ks[11], (1, feat), _F32)
    p["gam_e"] = 1.0 + 0.1 * jax.random.normal(ks[12], (1, feat), _F32)
    p["bet_e"] = 0.1 * jax.random.normal(ks[13], (1, feat), _F32)
    return p


if __name__ == "__main__":
    key = jax.random.PRNGKey(0)
    ks = jax.random.split(key, 10)

    F = 32          # in_features == out_features (required by residual add)
    N = 8           # nodes of g
    E = 16          # edges of g == nodes of line graph lg
    E2 = 24         # edges of lg (bond-angle triplets)

    x = jax.random.normal(ks[0], (N, F), _F32)    # node features
    y = jax.random.normal(ks[1], (E, F), _F32)    # edge features
    z = jax.random.normal(ks[2], (E2, F), _F32)   # edge-pair features

    src = jax.random.randint(ks[3], (E,), 0, N)
    dst = jax.random.randint(ks[4], (E,), 0, N)
    lsrc = jax.random.randint(ks[5], (E2,), 0, E)
    ldst = jax.random.randint(ks[6], (E2,), 0, E)

    src_oh = jax.nn.one_hot(src, N, dtype=_F32)     # (E, N)
    dst_oh = jax.nn.one_hot(dst, N, dtype=_F32)     # (E, N)
    lsrc_oh = jax.nn.one_hot(lsrc, E, dtype=_F32)   # (E2, E)
    ldst_oh = jax.nn.one_hot(ldst, E, dtype=_F32)   # (E2, E)

    node_params = _make_egc_params(ks[7], F)
    edge_params = _make_egc_params(ks[8], F)

    # Reference (pure JAX, module semantics) computed before the kernel so the
    # aliased/donated padded buffers are never reused.
    x_ref, y_ref_, z_ref = _alignn_ref(x, y, z, src, dst, lsrc, ldst,
                                       node_params, edge_params)

    x_out, y_out, z_out = alignn_conv(x, y, z, src_oh, dst_oh, lsrc_oh, ldst_oh,
                                      node_params, edge_params)
    jax.block_until_ready((x_out, y_out, z_out))

    assert x_out.shape == (N, F) and y_out.shape == (E, F) and z_out.shape == (E2, F)
    np.testing.assert_allclose(np.asarray(x_out), np.asarray(x_ref), rtol=5e-2, atol=5e-2)
    np.testing.assert_allclose(np.asarray(y_out), np.asarray(y_ref_), rtol=5e-2, atol=5e-2)
    np.testing.assert_allclose(np.asarray(z_out), np.asarray(z_ref), rtol=5e-2, atol=5e-2)
    print("KERNEL_OK")
</pallas_src>

<mosaic_0001>
module attributes {stable_mosaic.version = 11 : i64} {
  func.func @_alignn_kernel(%arg0: i32, %arg1: memref<8x128xf32, #tpu.memory_space<vmem>>, %arg2: memref<16x128xf32, #tpu.memory_space<vmem>>, %arg3: memref<24x128xf32, #tpu.memory_space<vmem>>, %arg4: memref<16x8xbf16, #tpu.memory_space<vmem>>, %arg5: memref<16x8xbf16, #tpu.memory_space<vmem>>, %arg6: memref<8x16xbf16, #tpu.memory_space<vmem>>, %arg7: memref<24x16xbf16, #tpu.memory_space<vmem>>, %arg8: memref<24x16xbf16, #tpu.memory_space<vmem>>, %arg9: memref<16x24xbf16, #tpu.memory_space<vmem>>, %arg10: memref<128x512xf32, #tpu.memory_space<vmem>>, %arg11: memref<1x512xf32, #tpu.memory_space<vmem>>, %arg12: memref<128x128xf32, #tpu.memory_space<vmem>>, %arg13: memref<1x128xf32, #tpu.memory_space<vmem>>, %arg14: memref<1x128xf32, #tpu.memory_space<vmem>>, %arg15: memref<1x128xf32, #tpu.memory_space<vmem>>, %arg16: memref<1x128xf32, #tpu.memory_space<vmem>>, %arg17: memref<1x128xf32, #tpu.memory_space<vmem>>, %arg18: memref<128x512xf32, #tpu.memory_space<vmem>>, %arg19: memref<1x512xf32, #tpu.memory_space<vmem>>, %arg20: memref<128x128xf32, #tpu.memory_space<vmem>>, %arg21: memref<1x128xf32, #tpu.memory_space<vmem>>, %arg22: memref<1x128xf32, #tpu.memory_space<vmem>>, %arg23: memref<1x128xf32, #tpu.memory_space<vmem>>, %arg24: memref<1x128xf32, #tpu.memory_space<vmem>>, %arg25: memref<1x128xf32, #tpu.memory_space<vmem>>, %arg26: memref<8x128xf32, #tpu.memory_space<vmem>>, %arg27: memref<16x128xf32, #tpu.memory_space<vmem>>, %arg28: memref<24x128xf32, #tpu.memory_space<vmem>>) attributes {dimension_semantics = [#tpu.dimension_semantics<arbitrary>], iteration_bounds = array<i64: 1>, scalar_prefetch = 0 : i64, scratch_operands = 0 : i64, tpu.core_type = #tpu.core_type<tc>, window_params = [{pipeline_mode = #tpu.pipeline_mode<synchronous>, transform_indices = @transform_0, window_bounds = array<i64: 8, 128>}, {pipeline_mode = #tpu.pipeline_mode<synchronous>, transform_indices = @transform_1, window_bounds = array<i64: 16, 128>}, {pipeline_mode = #tpu.pipeline_mode<synchronous>, transform_indices = @transform_2, window_bounds = array<i64: 24, 128>}, {pipeline_mode = #tpu.pipeline_mode<synchronous>, transform_indices = @transform_3, window_bounds = array<i64: 16, 8>}, {pipeline_mode = #tpu.pipeline_mode<synchronous>, transform_indices = @transform_4, window_bounds = array<i64: 16, 8>}, {pipeline_mode = #tpu.pipeline_mode<synchronous>, transform_indices = @transform_5, window_bounds = array<i64: 8, 16>}, {pipeline_mode = #tpu.pipeline_mode<synchronous>, transform_indices = @transform_6, window_bounds = array<i64: 24, 16>}, {pipeline_mode = #tpu.pipeline_mode<synchronous>, transform_indices = @transform_7, window_bounds = array<i64: 24, 16>}, {pipeline_mode = #tpu.pipeline_mode<synchronous>, transform_indices = @transform_8, window_bounds = array<i64: 16, 24>}, {pipeline_mode = #tpu.pipeline_mode<synchronous>, transform_indices = @transform_9, window_bounds = array<i64: 128, 512>}, {pipeline_mode = #tpu.pipeline_mode<synchronous>, transform_indices = @transform_10, window_bounds = array<i64: 1, 512>}, {pipeline_mode = #tpu.pipeline_mode<synchronous>, transform_indices = @transform_11, window_bounds = array<i64: 128, 128>}, {pipeline_mode = #tpu.pipeline_mode<synchronous>, transform_indices = @transform_12, window_bounds = array<i64: 1, 128>}, {pipeline_mode = #tpu.pipeline_mode<synchronous>, transform_indices = @transform_13, window_bounds = array<i64: 1, 128>}, {pipeline_mode = #tpu.pipeline_mode<synchronous>, transform_indices = @transform_14, window_bounds = array<i64: 1, 128>}, {pipeline_mode = #tpu.pipeline_mode<synchronous>, transform_indices = @transform_15, window_bounds = array<i64: 1, 128>}, {pipeline_mode = #tpu.pipeline_mode<synchronous>, transform_indices = @transform_16, window_bounds = array<i64: 1, 128>}, {pipeline_mode = #tpu.pipeline_mode<synchronous>, transform_indices = @transform_17, window_bounds = array<i64: 128, 512>}, {pipeline_mode = #tpu.pipeline_mode<synchronous>, transform_indices = @transform_18, window_bounds = array<i64: 1, 512>}, {pipeline_mode = #tpu.pipeline_mode<synchronous>, transform_indices = @transform_19, window_bounds = array<i64: 128, 128>}, {pipeline_mode = #tpu.pipeline_mode<synchronous>, transform_indices = @transform_20, window_bounds = array<i64: 1, 128>}, {pipeline_mode = #tpu.pipeline_mode<synchronous>, transform_indices = @transform_21, window_bounds = array<i64: 1, 128>}, {pipeline_mode = #tpu.pipeline_mode<synchronous>, transform_indices = @transform_22, window_bounds = array<i64: 1, 128>}, {pipeline_mode = #tpu.pipeline_mode<synchronous>, transform_indices = @transform_23, window_bounds = array<i64: 1, 128>}, {pipeline_mode = #tpu.pipeline_mode<synchronous>, transform_indices = @transform_24, window_bounds = array<i64: 1, 128>}, {pipeline_mode = #tpu.pipeline_mode<synchronous>, transform_indices = @transform_25, window_bounds = array<i64: 8, 128>}, {pipeline_mode = #tpu.pipeline_mode<synchronous>, transform_indices = @transform_26, window_bounds = array<i64: 16, 128>}, {pipeline_mode = #tpu.pipeline_mode<synchronous>, transform_indices = @transform_27, window_bounds = array<i64: 24, 128>}]} {
    %c0 = arith.constant 0 : index
    %c0_0 = arith.constant 0 : index
    %0 = vector.load %arg1[%c0, %c0_0] : memref<8x128xf32, #tpu.memory_space<vmem>>, vector<8x128xf32>
    %c0_1 = arith.constant 0 : index
    %c0_2 = arith.constant 0 : index
    %1 = vector.load %arg2[%c0_1, %c0_2] : memref<16x128xf32, #tpu.memory_space<vmem>>, vector<16x128xf32>
    %c0_3 = arith.constant 0 : index
    %c0_4 = arith.constant 0 : index
    %2 = vector.load %arg3[%c0_3, %c0_4] : memref<24x128xf32, #tpu.memory_space<vmem>>, vector<24x128xf32>
    %c0_5 = arith.constant 0 : index
    %c0_6 = arith.constant 0 : index
    %3 = vector.load %arg4[%c0_5, %c0_6] : memref<16x8xbf16, #tpu.memory_space<vmem>>, vector<16x8xbf16>
    %c0_7 = arith.constant 0 : index
    %c0_8 = arith.constant 0 : index
    %4 = vector.load %arg5[%c0_7, %c0_8] : memref<16x8xbf16, #tpu.memory_space<vmem>>, vector<16x8xbf16>
    %c0_9 = arith.constant 0 : index
    %c0_10 = arith.constant 0 : index
    %5 = vector.load %arg6[%c0_9, %c0_10] : memref<8x16xbf16, #tpu.memory_space<vmem>>, vector<8x16xbf16>
    %c0_11 = arith.constant 0 : index
    %c0_12 = arith.constant 0 : index
    %6 = vector.load %arg10[%c0_11, %c0_12] : memref<128x512xf32, #tpu.memory_space<vmem>>, vector<128x512xf32>
    %cst = arith.constant dense<0.000000e+00> : vector<8x512xf32>
    %7 = tpu.matmul %0, %6, %cst {dimension_numbers = #tpu.dot_dimension_numbers<[1], [0], [0], [1], [0, 0, 1, 1], [], []>} : vector<8x128xf32>, vector<128x512xf32>, vector<8x512xf32> -> vector<8x512xf32>
    %c0_13 = arith.constant 0 : index
    %c0_14 = arith.constant 0 : index
    %8 = vector.load %arg11[%c0_13, %c0_14] : memref<1x512xf32, #tpu.memory_space<vmem>>, vector<1x512xf32>
    %9 = vector.broadcast %8 : vector<1x512xf32> to vector<8x512xf32>
    %10 = arith.addf %7, %9 : vector<8x512xf32>
    %c0_15 = arith.constant 0 : index
    %c0_16 = arith.constant 0 : index
    %11 = vector.load %arg12[%c0_15, %c0_16] : memref<128x128xf32, #tpu.memory_space<vmem>>, vector<128x128xf32>
    %cst_17 = arith.constant dense<0.000000e+00> : vector<16x128xf32>
    %12 = tpu.matmul %1, %11, %cst_17 {dimension_numbers = #tpu.dot_dimension_numbers<[1], [0], [0], [1], [0, 0, 1, 1], [], []>} : vector<16x128xf32>, vector<128x128xf32>, vector<16x128xf32> -> vector<16x128xf32>
    %c0_18 = arith.constant 0 : index
    %c0_19 = arith.constant 0 : index
    %13 = vector.load %arg13[%c0_18, %c0_19] : memref<1x128xf32, #tpu.memory_space<vmem>>, vector<1x128xf32>
    %14 = vector.broadcast %13 : vector<1x128xf32> to vector<16x128xf32>
    %15 = arith.addf %12, %14 : vector<16x128xf32>
    %16 = vector.extract_strided_slice %10 {offsets = [0, 0], sizes = [8, 384], strides = [1, 1]} : vector<8x512xf32> to vector<8x384xf32>
    %17 = arith.truncf %16 : vector<8x384xf32> to vector<8x384xbf16>
    %18 = vector.extract_strided_slice %17 {offsets = [0, 0], sizes = [8, 256], strides = [1, 1]} : vector<8x384xbf16> to vector<8x256xbf16>
    %cst_20 = arith.constant dense<0.000000e+00> : vector<16x256xf32>
    %19 = tpu.matmul %3, %18, %cst_20 {dimension_numbers = #tpu.dot_dimension_numbers<[1], [0], [0], [1], [0, 0, 1, 1], [], []>} : vector<16x8xbf16>, vector<8x256xbf16>, vector<16x256xf32> -> vector<16x256xf32>
    %20 = vector.extract_strided_slice %17 {offsets = [0, 256], sizes = [8, 128], strides = [1, 1]} : vector<8x384xbf16> to vector<8x128xbf16>
    %cst_21 = arith.constant dense<0.000000e+00> : vector<16x128xf32>
    %21 = tpu.matmul %4, %20, %cst_21 {dimension_numbers = #tpu.dot_dimension_numbers<[1], [0], [0], [1], [0, 0, 1, 1], [], []>} : vector<16x8xbf16>, vector<8x128xbf16>, vector<16x128xf32> -> vector<16x128xf32>
    %22 = vector.extract_strided_slice %19 {offsets = [0, 0], sizes = [16, 128], strides = [1, 1]} : vector<16x256xf32> to vector<16x128xf32>
    %23 = arith.addf %22, %21 : vector<16x128xf32>
    %24 = arith.addf %23, %15 : vector<16x128xf32>
    %25 = vector.extract_strided_slice %19 {offsets = [0, 128], sizes = [16, 128], strides = [1, 1]} : vector<16x256xf32> to vector<16x128xf32>
    %cst_22 = arith.constant 0.000000e+00 : f32
    %26 = vector.broadcast %cst_22 : f32 to vector<16x128xf32>
    %27 = arith.subf %26, %24 : vector<16x128xf32>
    %28 = math.exp %27 : vector<16x128xf32>
    %cst_23 = arith.constant 1.000000e+00 : f32
    %29 = vector.broadcast %cst_23 : f32 to vector<16x128xf32>
    %30 = arith.addf %29, %28 : vector<16x128xf32>
    %31 = tpu.reciprocal %30 {approx = true} : vector<16x128xf32> -> vector<16x128xf32>
    %32 = arith.mulf %31, %25 : vector<16x128xf32>
    %33 = arith.truncf %32 : vector<16x128xf32> to vector<16x128xbf16>
    %cst_24 = arith.constant dense<0.000000e+00> : vector<8x128xf32>
    %34 = tpu.matmul %5, %33, %cst_24 {dimension_numbers = #tpu.dot_dimension_numbers<[1], [0], [0], [1], [0, 0, 1, 1], [], []>} : vector<8x16xbf16>, vector<16x128xbf16>, vector<8x128xf32> -> vector<8x128xf32>
    %35 = arith.truncf %31 : vector<16x128xf32> to vector<16x128xbf16>
    %cst_25 = arith.constant dense<0.000000e+00> : vector<8x128xf32>
    %36 = tpu.matmul %5, %35, %cst_25 {dimension_numbers = #tpu.dot_dimension_numbers<[1], [0], [0], [1], [0, 0, 1, 1], [], []>} : vector<8x16xbf16>, vector<16x128xbf16>, vector<8x128xf32> -> vector<8x128xf32>
    %cst_26 = arith.constant 9.99999997E-7 : f32
    %37 = vector.broadcast %cst_26 : f32 to vector<8x128xf32>
    %38 = arith.addf %36, %37 : vector<8x128xf32>
    %39 = tpu.reciprocal %38 {approx = true} : vector<8x128xf32> -> vector<8x128xf32>
    %40 = arith.mulf %34, %39 : vector<8x128xf32>
    %41 = vector.extract_strided_slice %10 {offsets = [0, 384], sizes = [8, 128], strides = [1, 1]} : vector<8x512xf32> to vector<8x128xf32>
    %42 = arith.addf %41, %40 : vector<8x128xf32>
    %c0_27 = arith.constant 0 : index
    %c0_28 = arith.constant 0 : index
    %43 = vector.load %arg14[%c0_27, %c0_28] : memref<1x128xf32, #tpu.memory_space<vmem>>, vector<1x128xf32>
    %c0_29 = arith.constant 0 : index
    %c0_30 = arith.constant 0 : index
    %44 = vector.load %arg15[%c0_29, %c0_30] : memref<1x128xf32, #tpu.memory_space<vmem>>, vector<1x128xf32>
    %cst_31 = arith.constant dense<0.000000e+00> : vector<128xf32>
    %45 = vector.multi_reduction <add>, %42, %cst_31 [0] : vector<8x128xf32> to vector<128xf32>
    %46 = vector.shape_cast %45 : vector<128xf32> to vector<1x128xf32>
    %cst_32 = arith.constant 1.250000e-01 : f32
    %47 = vector.broadcast %cst_32 : f32 to vector<1x128xf32>
    %48 = arith.mulf %46, %47 : vector<1x128xf32>
    %49 = arith.mulf %42, %42 : vector<8x128xf32>
    %cst_33 = arith.constant dense<0.000000e+00> : vector<128xf32>
    %50 = vector.multi_reduction <add>, %49, %cst_33 [0] : vector<8x128xf32> to vector<128xf32>
    %51 = vector.shape_cast %50 : vector<128xf32> to vector<1x128xf32>
    %cst_34 = arith.constant 1.250000e-01 : f32
    %52 = vector.broadcast %cst_34 : f32 to vector<1x128xf32>
    %53 = arith.mulf %51, %52 : vector<1x128xf32>
    %54 = arith.mulf %48, %48 : vector<1x128xf32>
    %55 = arith.subf %53, %54 : vector<1x128xf32>
    %cst_35 = arith.constant 0.000000e+00 : f32
    %56 = vector.broadcast %cst_35 : f32 to vector<1x128xf32>
    %57 = arith.maximumf %55, %56 : vector<1x128xf32>
    %58 = vector.broadcast %48 : vector<1x128xf32> to vector<8x128xf32>
    %59 = arith.subf %42, %58 : vector<8x128xf32>
    %cst_36 = arith.constant 9.99999974E-6 : f32
    %60 = vector.broadcast %cst_36 : f32 to vector<1x128xf32>
    %61 = arith.addf %57, %60 : vector<1x128xf32>
    %62 = math.rsqrt %61 : vector<1x128xf32>
    %63 = vector.broadcast %62 : vector<1x128xf32> to vector<8x128xf32>
    %64 = arith.mulf %59, %63 : vector<8x128xf32>
    %65 = vector.broadcast %43 : vector<1x128xf32> to vector<8x128xf32>
    %66 = arith.mulf %64, %65 : vector<8x128xf32>
    %67 = vector.broadcast %44 : vector<1x128xf32> to vector<8x128xf32>
    %68 = arith.addf %66, %67 : vector<8x128xf32>
    %cst_37 = arith.constant 0.000000e+00 : f32
    %cst_38 = arith.constant 6.000000e+00 : f32
    %69 = vector.broadcast %cst_37 : f32 to vector<8x128xf32>
    %70 = arith.maximumf %69, %68 : vector<8x128xf32>
    %71 = vector.broadcast %cst_38 : f32 to vector<8x128xf32>
    %72 = arith.minimumf %71, %70 : vector<8x128xf32>
    %c0_39 = arith.constant 0 : index
    %c0_40 = arith.constant 0 : index
    %73 = vector.load %arg16[%c0_39, %c0_40] : memref<1x128xf32, #tpu.memory_space<vmem>>, vector<1x128xf32>
    %c0_41 = arith.constant 0 : index
    %c0_42 = arith.constant 0 : index
    %74 = vector.load %arg17[%c0_41, %c0_42] : memref<1x128xf32, #tpu.memory_space<vmem>>, vector<1x128xf32>
    %cst_43 = arith.constant dense<0.000000e+00> : vector<128xf32>
    %75 = vector.multi_reduction <add>, %24, %cst_43 [0] : vector<16x128xf32> to vector<128xf32>
    %76 = vector.shape_cast %75 : vector<128xf32> to vector<1x128xf32>
    %cst_44 = arith.constant 6.250000e-02 : f32
    %77 = vector.broadcast %cst_44 : f32 to vector<1x128xf32>
    %78 = arith.mulf %76, %77 : vector<1x128xf32>
    %79 = arith.mulf %24, %24 : vector<16x128xf32>
    %cst_45 = arith.constant dense<0.000000e+00> : vector<128xf32>
    %80 = vector.multi_reduction <add>, %79, %cst_45 [0] : vector<16x128xf32> to vector<128xf32>
    %81 = vector.shape_cast %80 : vector<128xf32> to vector<1x128xf32>
    %cst_46 = arith.constant 6.250000e-02 : f32
    %82 = vector.broadcast %cst_46 : f32 to vector<1x128xf32>
    %83 = arith.mulf %81, %82 : vector<1x128xf32>
    %84 = arith.mulf %78, %78 : vector<1x128xf32>
    %85 = arith.subf %83, %84 : vector<1x128xf32>
    %cst_47 = arith.constant 0.000000e+00 : f32
    %86 = vector.broadcast %cst_47 : f32 to vector<1x128xf32>
    %87 = arith.maximumf %85, %86 : vector<1x128xf32>
    %88 = vector.broadcast %78 : vector<1x128xf32> to vector<16x128xf32>
    %89 = arith.subf %24, %88 : vector<16x128xf32>
    %cst_48 = arith.constant 9.99999974E-6 : f32
    %90 = vector.broadcast %cst_48 : f32 to vector<1x128xf32>
    %91 = arith.addf %87, %90 : vector<1x128xf32>
    %92 = math.rsqrt %91 : vector<1x128xf32>
    %93 = vector.broadcast %92 : vector<1x128xf32> to vector<16x128xf32>
    %94 = arith.mulf %89, %93 : vector<16x128xf32>
    %95 = vector.broadcast %73 : vector<1x128xf32> to vector<16x128xf32>
    %96 = arith.mulf %94, %95 : vector<16x128xf32>
    %97 = vector.broadcast %74 : vector<1x128xf32> to vector<16x128xf32>
    %98 = arith.addf %96, %97 : vector<16x128xf32>
    %cst_49 = arith.constant 0.000000e+00 : f32
    %cst_50 = arith.constant 6.000000e+00 : f32
    %99 = vector.broadcast %cst_49 : f32 to vector<16x128xf32>
    %100 = arith.maximumf %99, %98 : vector<16x128xf32>
    %101 = vector.broadcast %cst_50 : f32 to vector<16x128xf32>
    %102 = arith.minimumf %101, %100 : vector<16x128xf32>
    %103 = arith.addf %0, %72 : vector<8x128xf32>
    %104 = arith.addf %1, %102 : vector<16x128xf32>
    %c0_51 = arith.constant 0 : index
    %c0_52 = arith.constant 0 : index
    %105 = vector.load %arg7[%c0_51, %c0_52] : memref<24x16xbf16, #tpu.memory_space<vmem>>, vector<24x16xbf16>
    %c0_53 = arith.constant 0 : index
    %c0_54 = arith.constant 0 : index
    %106 = vector.load %arg8[%c0_53, %c0_54] : memref<24x16xbf16, #tpu.memory_space<vmem>>, vector<24x16xbf16>
    %c0_55 = arith.constant 0 : index
    %c0_56 = arith.constant 0 : index
    %107 = vector.load %arg9[%c0_55, %c0_56] : memref<16x24xbf16, #tpu.memory_space<vmem>>, vector<16x24xbf16>
    %c0_57 = arith.constant 0 : index
    %c0_58 = arith.constant 0 : index
    %108 = vector.load %arg18[%c0_57, %c0_58] : memref<128x512xf32, #tpu.memory_space<vmem>>, vector<128x512xf32>
    %cst_59 = arith.constant dense<0.000000e+00> : vector<16x512xf32>
    %109 = tpu.matmul %104, %108, %cst_59 {dimension_numbers = #tpu.dot_dimension_numbers<[1], [0], [0], [1], [0, 0, 1, 1], [], []>} : vector<16x128xf32>, vector<128x512xf32>, vector<16x512xf32> -> vector<16x512xf32>
    %c0_60 = arith.constant 0 : index
    %c0_61 = arith.constant 0 : index
    %110 = vector.load %arg19[%c0_60, %c0_61] : memref<1x512xf32, #tpu.memory_space<vmem>>, vector<1x512xf32>
    %111 = vector.broadcast %110 : vector<1x512xf32> to vector<16x512xf32>
    %112 = arith.addf %109, %111 : vector<16x512xf32>
    %c0_62 = arith.constant 0 : index
    %c0_63 = arith.constant 0 : index
    %113 = vector.load %arg20[%c0_62, %c0_63] : memref<128x128xf32, #tpu.memory_space<vmem>>, vector<128x128xf32>
    %cst_64 = arith.constant dense<0.000000e+00> : vector<24x128xf32>
    %114 = tpu.matmul %2, %113, %cst_64 {dimension_numbers = #tpu.dot_dimension_numbers<[1], [0], [0], [1], [0, 0, 1, 1], [], []>} : vector<24x128xf32>, vector<128x128xf32>, vector<24x128xf32> -> vector<24x128xf32>
    %c0_65 = arith.constant 0 : index
    %c0_66 = arith.constant 0 : index
    %115 = vector.load %arg21[%c0_65, %c0_66] : memref<1x128xf32, #tpu.memory_space<vmem>>, vector<1x128xf32>
    %116 = vector.broadcast %115 : vector<1x128xf32> to vector<24x128xf32>
    %117 = arith.addf %114, %116 : vector<24x128xf32>
    %118 = vector.extract_strided_slice %112 {offsets = [0, 0], sizes = [16, 384], strides = [1, 1]} : vector<16x512xf32> to vector<16x384xf32>
    %119 = arith.truncf %118 : vector<16x384xf32> to vector<16x384xbf16>
    %120 = vector.extract_strided_slice %119 {offsets = [0, 0], sizes = [16, 256], strides = [1, 1]} : vector<16x384xbf16> to vector<16x256xbf16>
    %cst_67 = arith.constant dense<0.000000e+00> : vector<24x256xf32>
    %121 = tpu.matmul %105, %120, %cst_67 {dimension_numbers = #tpu.dot_dimension_numbers<[1], [0], [0], [1], [0, 0, 1, 1], [], []>} : vector<24x16xbf16>, vector<16x256xbf16>, vector<24x256xf32> -> vector<24x256xf32>
    %122 = vector.extract_strided_slice %119 {offsets = [0, 256], sizes = [16, 128], strides = [1, 1]} : vector<16x384xbf16> to vector<16x128xbf16>
    %cst_68 = arith.constant dense<0.000000e+00> : vector<24x128xf32>
    %123 = tpu.matmul %106, %122, %cst_68 {dimension_numbers = #tpu.dot_dimension_numbers<[1], [0], [0], [1], [0, 0, 1, 1], [], []>} : vector<24x16xbf16>, vector<16x128xbf16>, vector<24x128xf32> -> vector<24x128xf32>
    %124 = vector.extract_strided_slice %121 {offsets = [0, 0], sizes = [24, 128], strides = [1, 1]} : vector<24x256xf32> to vector<24x128xf32>
    %125 = arith.addf %124, %123 : vector<24x128xf32>
    %126 = arith.addf %125, %117 : vector<24x128xf32>
    %127 = vector.extract_strided_slice %121 {offsets = [0, 128], sizes = [24, 128], strides = [1, 1]} : vector<24x256xf32> to vector<24x128xf32>
    %cst_69 = arith.constant 0.000000e+00 : f32
    %128 = vector.broadcast %cst_69 : f32 to vector<24x128xf32>
    %129 = arith.subf %128, %126 : vector<24x128xf32>
    %130 = math.exp %129 : vector<24x128xf32>
    %cst_70 = arith.constant 1.000000e+00 : f32
    %131 = vector.broadcast %cst_70 : f32 to vector<24x128xf32>
    %132 = arith.addf %131, %130 : vector<24x128xf32>
    %133 = tpu.reciprocal %132 {approx = true} : vector<24x128xf32> -> vector<24x128xf32>
    %134 = arith.mulf %133, %127 : vector<24x128xf32>
    %135 = arith.truncf %134 : vector<24x128xf32> to vector<24x128xbf16>
    %cst_71 = arith.constant dense<0.000000e+00> : vector<16x128xf32>
    %136 = tpu.matmul %107, %135, %cst_71 {dimension_numbers = #tpu.dot_dimension_numbers<[1], [0], [0], [1], [0, 0, 1, 1], [], []>} : vector<16x24xbf16>, vector<24x128xbf16>, vector<16x128xf32> -> vector<16x128xf32>
    %137 = arith.truncf %133 : vector<24x128xf32> to vector<24x128xbf16>
    %cst_72 = arith.constant dense<0.000000e+00> : vector<16x128xf32>
    %138 = tpu.matmul %107, %137, %cst_72 {dimension_numbers = #tpu.dot_dimension_numbers<[1], [0], [0], [1], [0, 0, 1, 1], [], []>} : vector<16x24xbf16>, vector<24x128xbf16>, vector<16x128xf32> -> vector<16x128xf32>
    %cst_73 = arith.constant 9.99999997E-7 : f32
    %139 = vector.broadcast %cst_73 : f32 to vector<16x128xf32>
    %140 = arith.addf %138, %139 : vector<16x128xf32>
    %141 = tpu.reciprocal %140 {approx = true} : vector<16x128xf32> -> vector<16x128xf32>
    %142 = arith.mulf %136, %141 : vector<16x128xf32>
    %143 = vector.extract_strided_slice %112 {offsets = [0, 384], sizes = [16, 128], strides = [1, 1]} : vector<16x512xf32> to vector<16x128xf32>
    %144 = arith.addf %143, %142 : vector<16x128xf32>
    %c0_74 = arith.constant 0 : index
    %c0_75 = arith.constant 0 : index
    %145 = vector.load %arg22[%c0_74, %c0_75] : memref<1x128xf32, #tpu.memory_space<vmem>>, vector<1x128xf32>
    %c0_76 = arith.constant 0 : index
    %c0_77 = arith.constant 0 : index
    %146 = vector.load %arg23[%c0_76, %c0_77] : memref<1x128xf32, #tpu.memory_space<vmem>>, vector<1x128xf32>
    %cst_78 = arith.constant dense<0.000000e+00> : vector<128xf32>
    %147 = vector.multi_reduction <add>, %144, %cst_78 [0] : vector<16x128xf32> to vector<128xf32>
    %148 = vector.shape_cast %147 : vector<128xf32> to vector<1x128xf32>
    %cst_79 = arith.constant 6.250000e-02 : f32
    %149 = vector.broadcast %cst_79 : f32 to vector<1x128xf32>
    %150 = arith.mulf %148, %149 : vector<1x128xf32>
    %151 = arith.mulf %144, %144 : vector<16x128xf32>
    %cst_80 = arith.constant dense<0.000000e+00> : vector<128xf32>
    %152 = vector.multi_reduction <add>, %151, %cst_80 [0] : vector<16x128xf32> to vector<128xf32>
    %153 = vector.shape_cast %152 : vector<128xf32> to vector<1x128xf32>
    %cst_81 = arith.constant 6.250000e-02 : f32
    %154 = vector.broadcast %cst_81 : f32 to vector<1x128xf32>
    %155 = arith.mulf %153, %154 : vector<1x128xf32>
    %156 = arith.mulf %150, %150 : vector<1x128xf32>
    %157 = arith.subf %155, %156 : vector<1x128xf32>
    %cst_82 = arith.constant 0.000000e+00 : f32
    %158 = vector.broadcast %cst_82 : f32 to vector<1x128xf32>
    %159 = arith.maximumf %157, %158 : vector<1x128xf32>
    %160 = vector.broadcast %150 : vector<1x128xf32> to vector<16x128xf32>
    %161 = arith.subf %144, %160 : vector<16x128xf32>
    %cst_83 = arith.constant 9.99999974E-6 : f32
    %162 = vector.broadcast %cst_83 : f32 to vector<1x128xf32>
    %163 = arith.addf %159, %162 : vector<1x128xf32>
    %164 = math.rsqrt %163 : vector<1x128xf32>
    %165 = vector.broadcast %164 : vector<1x128xf32> to vector<16x128xf32>
    %166 = arith.mulf %161, %165 : vector<16x128xf32>
    %167 = vector.broadcast %145 : vector<1x128xf32> to vector<16x128xf32>
    %168 = arith.mulf %166, %167 : vector<16x128xf32>
    %169 = vector.broadcast %146 : vector<1x128xf32> to vector<16x128xf32>
    %170 = arith.addf %168, %169 : vector<16x128xf32>
    %cst_84 = arith.constant 0.000000e+00 : f32
    %cst_85 = arith.constant 6.000000e+00 : f32
    %171 = vector.broadcast %cst_84 : f32 to vector<16x128xf32>
    %172 = arith.maximumf %171, %170 : vector<16x128xf32>
    %173 = vector.broadcast %cst_85 : f32 to vector<16x128xf32>
    %174 = arith.minimumf %173, %172 : vector<16x128xf32>
    %c0_86 = arith.constant 0 : index
    %c0_87 = arith.constant 0 : index
    %175 = vector.load %arg24[%c0_86, %c0_87] : memref<1x128xf32, #tpu.memory_space<vmem>>, vector<1x128xf32>
    %c0_88 = arith.constant 0 : index
    %c0_89 = arith.constant 0 : index
    %176 = vector.load %arg25[%c0_88, %c0_89] : memref<1x128xf32, #tpu.memory_space<vmem>>, vector<1x128xf32>
    %cst_90 = arith.constant dense<0.000000e+00> : vector<128xf32>
    %177 = vector.multi_reduction <add>, %126, %cst_90 [0] : vector<24x128xf32> to vector<128xf32>
    %178 = vector.shape_cast %177 : vector<128xf32> to vector<1x128xf32>
    %cst_91 = arith.constant 0.0416666679 : f32
    %179 = vector.broadcast %cst_91 : f32 to vector<1x128xf32>
    %180 = arith.mulf %178, %179 : vector<1x128xf32>
    %181 = arith.mulf %126, %126 : vector<24x128xf32>
    %cst_92 = arith.constant dense<0.000000e+00> : vector<128xf32>
    %182 = vector.multi_reduction <add>, %181, %cst_92 [0] : vector<24x128xf32> to vector<128xf32>
    %183 = vector.shape_cast %182 : vector<128xf32> to vector<1x128xf32>
    %cst_93 = arith.constant 0.0416666679 : f32
    %184 = vector.broadcast %cst_93 : f32 to vector<1x128xf32>
    %185 = arith.mulf %183, %184 : vector<1x128xf32>
    %186 = arith.mulf %180, %180 : vector<1x128xf32>
    %187 = arith.subf %185, %186 : vector<1x128xf32>
    %cst_94 = arith.constant 0.000000e+00 : f32
    %188 = vector.broadcast %cst_94 : f32 to vector<1x128xf32>
    %189 = arith.maximumf %187, %188 : vector<1x128xf32>
    %190 = vector.broadcast %180 : vector<1x128xf32> to vector<24x128xf32>
    %191 = arith.subf %126, %190 : vector<24x128xf32>
    %cst_95 = arith.constant 9.99999974E-6 : f32
    %192 = vector.broadcast %cst_95 : f32 to vector<1x128xf32>
    %193 = arith.addf %189, %192 : vector<1x128xf32>
    %194 = math.rsqrt %193 : vector<1x128xf32>
    %195 = vector.broadcast %194 : vector<1x128xf32> to vector<24x128xf32>
    %196 = arith.mulf %191, %195 : vector<24x128xf32>
    %197 = vector.broadcast %175 : vector<1x128xf32> to vector<24x128xf32>
    %198 = arith.mulf %196, %197 : vector<24x128xf32>
    %199 = vector.broadcast %176 : vector<1x128xf32> to vector<24x128xf32>
    %200 = arith.addf %198, %199 : vector<24x128xf32>
    %cst_96 = arith.constant 0.000000e+00 : f32
    %cst_97 = arith.constant 6.000000e+00 : f32
    %201 = vector.broadcast %cst_96 : f32 to vector<24x128xf32>
    %202 = arith.maximumf %201, %200 : vector<24x128xf32>
    %203 = vector.broadcast %cst_97 : f32 to vector<24x128xf32>
    %204 = arith.minimumf %203, %202 : vector<24x128xf32>
    %205 = arith.addf %104, %174 : vector<16x128xf32>
    %206 = arith.addf %2, %204 : vector<24x128xf32>
    %c0_98 = arith.constant 0 : index
    %c0_99 = arith.constant 0 : index
    %207 = vector.load %arg26[%c0_98, %c0_99] : memref<8x128xf32, #tpu.memory_space<vmem>>, vector<8x128xf32>
    tpu.vector_store %arg26[%c0_98, %c0_99], %103 {strides = array<i32>} : memref<8x128xf32, #tpu.memory_space<vmem>>, vector<8x128xf32>,
    %c0_100 = arith.constant 0 : index
    %c0_101 = arith.constant 0 : index
    %208 = vector.load %arg27[%c0_100, %c0_101] : memref<16x128xf32, #tpu.memory_space<vmem>>, vector<16x128xf32>
    tpu.vector_store %arg27[%c0_100, %c0_101], %205 {strides = array<i32>} : memref<16x128xf32, #tpu.memory_space<vmem>>, vector<16x128xf32>,
    %c0_102 = arith.constant 0 : index
    %c0_103 = arith.constant 0 : index
    %209 = vector.load %arg28[%c0_102, %c0_103] : memref<24x128xf32, #tpu.memory_space<vmem>>, vector<24x128xf32>
    tpu.vector_store %arg28[%c0_102, %c0_103], %206 {strides = array<i32>} : memref<24x128xf32, #tpu.memory_space<vmem>>, vector<24x128xf32>,
    return
  }
  func.func @transform_0(%arg0: i32) -> (i32, i32) {
    %c0_i32 = arith.constant 0 : i32
    %c0_i32_0 = arith.constant 0 : i32
    %c0_i32_1 = arith.constant 0 : i32
    return %c0_i32, %c0_i32_0 : i32, i32
  }
  func.func @transform_1(%arg0: i32) -> (i32, i32) {
    %c0_i32 = arith.constant 0 : i32
    %c0_i32_0 = arith.constant 0 : i32
    %c0_i32_1 = arith.constant 0 : i32
    return %c0_i32, %c0_i32_0 : i32, i32
  }
  func.func @transform_2(%arg0: i32) -> (i32, i32) {
    %c0_i32 = arith.constant 0 : i32
    %c0_i32_0 = arith.constant 0 : i32
    %c0_i32_1 = arith.constant 0 : i32
    return %c0_i32, %c0_i32_0 : i32, i32
  }
  func.func @transform_3(%arg0: i32) -> (i32, i32) {
    %c0_i32 = arith.constant 0 : i32
    %c0_i32_0 = arith.constant 0 : i32
    %c0_i32_1 = arith.constant 0 : i32
    return %c0_i32, %c0_i32_0 : i32, i32
  }
  func.func @transform_4(%arg0: i32) -> (i32, i32) {
    %c0_i32 = arith.constant 0 : i32
    %c0_i32_0 = arith.constant 0 : i32
    %c0_i32_1 = arith.constant 0 : i32
    return %c0_i32, %c0_i32_0 : i32, i32
  }
  func.func @transform_5(%arg0: i32) -> (i32, i32) {
    %c0_i32 = arith.constant 0 : i32
    %c0_i32_0 = arith.constant 0 : i32
    %c0_i32_1 = arith.constant 0 : i32
    return %c0_i32, %c0_i32_0 : i32, i32
  }
  func.func @transform_6(%arg0: i32) -> (i32, i32) {
    %c0_i32 = arith.constant 0 : i32
    %c0_i32_0 = arith.constant 0 : i32
    %c0_i32_1 = arith.constant 0 : i32
    return %c0_i32, %c0_i32_0 : i32, i32
  }
  func.func @transform_7(%arg0: i32) -> (i32, i32) {
    %c0_i32 = arith.constant 0 : i32
    %c0_i32_0 = arith.constant 0 : i32
    %c0_i32_1 = arith.constant 0 : i32
    return %c0_i32, %c0_i32_0 : i32, i32
  }
  func.func @transform_8(%arg0: i32) -> (i32, i32) {
    %c0_i32 = arith.constant 0 : i32
    %c0_i32_0 = arith.constant 0 : i32
    %c0_i32_1 = arith.constant 0 : i32
    return %c0_i32, %c0_i32_0 : i32, i32
  }
  func.func @transform_9(%arg0: i32) -> (i32, i32) {
    %c0_i32 = arith.constant 0 : i32
    %c0_i32_0 = arith.constant 0 : i32
    %c0_i32_1 = arith.constant 0 : i32
    return %c0_i32, %c0_i32_0 : i32, i32
  }
  func.func @transform_10(%arg0: i32) -> (i32, i32) {
    %c0_i32 = arith.constant 0 : i32
    %c0_i32_0 = arith.constant 0 : i32
    %c0_i32_1 = arith.constant 0 : i32
    return %c0_i32, %c0_i32_0 : i32, i32
  }
  func.func @transform_11(%arg0: i32) -> (i32, i32) {
    %c0_i32 = arith.constant 0 : i32
    %c0_i32_0 = arith.constant 0 : i32
    %c0_i32_1 = arith.constant 0 : i32
    return %c0_i32, %c0_i32_0 : i32, i32
  }
  func.func @transform_12(%arg0: i32) -> (i32, i32) {
    %c0_i32 = arith.constant 0 : i32
    %c0_i32_0 = arith.constant 0 : i32
    %c0_i32_1 = arith.constant 0 : i32
    return %c0_i32, %c0_i32_0 : i32, i32
  }
  func.func @transform_13(%arg0: i32) -> (i32, i32) {
    %c0_i32 = arith.constant 0 : i32
    %c0_i32_0 = arith.constant 0 : i32
    %c0_i32_1 = arith.constant 0 : i32
    return %c0_i32, %c0_i32_0 : i32, i32
  }
  func.func @transform_14(%arg0: i32) -> (i32, i32) {
    %c0_i32 = arith.constant 0 : i32
    %c0_i32_0 = arith.constant 0 : i32
    %c0_i32_1 = arith.constant 0 : i32
    return %c0_i32, %c0_i32_0 : i32, i32
  }
  func.func @transform_15(%arg0: i32) -> (i32, i32) {
    %c0_i32 = arith.constant 0 : i32
    %c0_i32_0 = arith.constant 0 : i32
    %c0_i32_1 = arith.constant 0 : i32
    return %c0_i32, %c0_i32_0 : i32, i32
  }
  func.func @transform_16(%arg0: i32) -> (i32, i32) {
    %c0_i32 = arith.constant 0 : i32
    %c0_i32_0 = arith.constant 0 : i32
    %c0_i32_1 = arith.constant 0 : i32
    return %c0_i32, %c0_i32_0 : i32, i32
  }
  func.func @transform_17(%arg0: i32) -> (i32, i32) {
    %c0_i32 = arith.constant 0 : i32
    %c0_i32_0 = arith.constant 0 : i32
    %c0_i32_1 = arith.constant 0 : i32
    return %c0_i32, %c0_i32_0 : i32, i32
  }
  func.func @transform_18(%arg0: i32) -> (i32, i32) {
    %c0_i32 = arith.constant 0 : i32
    %c0_i32_0 = arith.constant 0 : i32
    %c0_i32_1 = arith.constant 0 : i32
    return %c0_i32, %c0_i32_0 : i32, i32
  }
  func.func @transform_19(%arg0: i32) -> (i32, i32) {
    %c0_i32 = arith.constant 0 : i32
    %c0_i32_0 = arith.constant 0 : i32
    %c0_i32_1 = arith.constant 0 : i32
    return %c0_i32, %c0_i32_0 : i32, i32
  }
  func.func @transform_20(%arg0: i32) -> (i32, i32) {
    %c0_i32 = arith.constant 0 : i32
    %c0_i32_0 = arith.constant 0 : i32
    %c0_i32_1 = arith.constant 0 : i32
    return %c0_i32, %c0_i32_0 : i32, i32
  }
  func.func @transform_21(%arg0: i32) -> (i32, i32) {
    %c0_i32 = arith.constant 0 : i32
    %c0_i32_0 = arith.constant 0 : i32
    %c0_i32_1 = arith.constant 0 : i32
    return %c0_i32, %c0_i32_0 : i32, i32
  }
  func.func @transform_22(%arg0: i32) -> (i32, i32) {
    %c0_i32 = arith.constant 0 : i32
    %c0_i32_0 = arith.constant 0 : i32
    %c0_i32_1 = arith.constant 0 : i32
    return %c0_i32, %c0_i32_0 : i32, i32
  }
  func.func @transform_23(%arg0: i32) -> (i32, i32) {
    %c0_i32 = arith.constant 0 : i32
    %c0_i32_0 = arith.constant 0 : i32
    %c0_i32_1 = arith.constant 0 : i32
    return %c0_i32, %c0_i32_0 : i32, i32
  }
  func.func @transform_24(%arg0: i32) -> (i32, i32) {
    %c0_i32 = arith.constant 0 : i32
    %c0_i32_0 = arith.constant 0 : i32
    %c0_i32_1 = arith.constant 0 : i32
    return %c0_i32, %c0_i32_0 : i32, i32
  }
  func.func @transform_25(%arg0: i32) -> (i32, i32) {
    %c0_i32 = arith.constant 0 : i32
    %c0_i32_0 = arith.constant 0 : i32
    %c0_i32_1 = arith.constant 0 : i32
    return %c0_i32, %c0_i32_0 : i32, i32
  }
  func.func @transform_26(%arg0: i32) -> (i32, i32) {
    %c0_i32 = arith.constant 0 : i32
    %c0_i32_0 = arith.constant 0 : i32
    %c0_i32_1 = arith.constant 0 : i32
    return %c0_i32, %c0_i32_0 : i32, i32
  }
  func.func @transform_27(%arg0: i32) -> (i32, i32) {
    %c0_i32 = arith.constant 0 : i32
    %c0_i32_0 = arith.constant 0 : i32
    %c0_i32_1 = arith.constant 0 : i32
    return %c0_i32, %c0_i32_0 : i32, i32
  }
}

</mosaic_0001>

<bundles_post_ra>
// kernel: tpu_custom_call.1
= control target key start
LH: loop header
LB: loop body
LE: loop exit
PB: predicated region body
PF: predicated region fallthrough
CT: control target
= control target key end

     0   :  { %s1944_s0 = inlined_call_operand.hbm [shape: f32[8,128], index: 0, kind: input, shape index: {}, may-alias: {0,25}]   ;;  %s1945_s1 = inlined_call_operand.hbm [shape: f32[16,128], index: 1, kind: input, shape index: {}, may-alias: {1,26}]   ;;  %s1946_s2 = inlined_call_operand.hbm [shape: f32[24,128], index: 2, kind: input, shape index: {}, may-alias: {2,27}]   ;;  %s1947_s3 = inlined_call_operand.vmem [shape: bf16[16,8], index: 3, kind: input, shape index: {}]   ;;  %s1948_s4 = inlined_call_operand.vmem [shape: bf16[16,8], index: 4, kind: input, shape index: {}]   ;;  %s1949_s5 = inlined_call_operand.vmem [shape: bf16[8,16], index: 5, kind: input, shape index: {}]   ;;  %s1950_s6 = inlined_call_operand.vmem [shape: bf16[24,16], index: 6, kind: input, shape index: {}]   ;;  %s1951_s7 = inlined_call_operand.vmem [shape: bf16[24,16], index: 7, kind: input, shape index: {}]   ;;  %s1952_s8 = inlined_call_operand.vmem [shape: bf16[16,24], index: 8, kind: input, shape index: {}]   ;;  %s1953_s9 = inlined_call_operand.hbm [shape: f32[128,512], index: 9, kind: input, shape index: {}]   ;;  %s1954_s10 = inlined_call_operand.vmem [shape: f32[1,512], index: 10, kind: input, shape index: {}]   ;;  %s1955_s11 = inlined_call_operand.hbm [shape: f32[128,128], index: 11, kind: input, shape index: {}]   ;;  %s1956_s12 = inlined_call_operand.vmem [shape: f32[1,128], index: 12, kind: input, shape index: {}]   ;;  %s1957_s13 = inlined_call_operand.vmem [shape: f32[1,128], index: 13, kind: input, shape index: {}]   ;;  %s1958_s14 = inlined_call_operand.vmem [shape: f32[1,128], index: 14, kind: input, shape index: {}]   ;;  %s1959_s15 = inlined_call_operand.vmem [shape: f32[1,128], index: 15, kind: input, shape index: {}]   ;;  %s1960_s16 = inlined_call_operand.vmem [shape: f32[1,128], index: 16, kind: input, shape index: {}]   ;;  %s1961_s17 = inlined_call_operand.hbm [shape: f32[128,512], index: 17, kind: input, shape index: {}]   ;;  %s1962_s18 = inlined_call_operand.vmem [shape: f32[1,512], index: 18, kind: input, shape index: {}]   ;;  %s1963_s19 = inlined_call_operand.hbm [shape: f32[128,128], index: 19, kind: input, shape index: {}]   ;;  %s1964_s20 = inlined_call_operand.vmem [shape: f32[1,128], index: 20, kind: input, shape index: {}]   ;;  %s1965_s21 = inlined_call_operand.vmem [shape: f32[1,128], index: 21, kind: input, shape index: {}]   ;;  %s1966_s22 = inlined_call_operand.vmem [shape: f32[1,128], index: 22, kind: input, shape index: {}]   ;;  %s1967_s23 = inlined_call_operand.vmem [shape: f32[1,128], index: 23, kind: input, shape index: {}]   ;;  %s1968_s24 = inlined_call_operand.vmem [shape: f32[1,128], index: 24, kind: input, shape index: {}]   ;;  %s1969_s25 = inlined_call_operand.hbm [shape: f32[8,128], index: 25, kind: output, shape index: {0}, may-alias: {0,25}]   ;;  %s1970_s26 = inlined_call_operand.hbm [shape: f32[16,128], index: 26, kind: output, shape index: {1}, may-alias: {1,26}]   ;;  %s1971_s27 = inlined_call_operand.hbm [shape: f32[24,128], index: 27, kind: output, shape index: {2}, may-alias: {2,27}]  }
   0x1   :  { %1978 = sst [smem:[#allocation24_spill]] %s1944_s0 }
   0x2   :  { %1979 = sst [smem:[#allocation25_spill]] %s1945_s1 }
   0x3   :  { %1980 = sst [smem:[#allocation26_spill]] %s1946_s2 }
   0x4   :  { %1981 = sst [smem:[#allocation27_spill]] %s1947_s3 }
   0x5   :  { %1982 = sst [smem:[#allocation28_spill]] %s1948_s4 }
   0x6   :  { %1983 = sst [smem:[#allocation29_spill]] %s1949_s5 }
   0x7   :  { %1984 = sst [smem:[#allocation30_spill]] %s1950_s6 }
   0x8   :  { %1985 = sst [smem:[#allocation31_spill]] %s1951_s7 }
   0x9   :  { %1986 = sst [smem:[#allocation32_spill]] %s1952_s8 }
   0xa   :  { %1987 = sst [smem:[#allocation33_spill]] %s1953_s9 }
   0xb   :  { %1988 = sst [smem:[#allocation34_spill]] %s1954_s10 }
   0xc   :  { %1989 = sst [smem:[#allocation35_spill]] %s1955_s11 }
   0xd   :  { %1990 = sst [smem:[#allocation36_spill]] %s1965_s21 }
   0xe   :  { %1991 = sst [smem:[#allocation37_spill]] %s1966_s22 }
   0xf   :  { %1992 = sst [smem:[#allocation38_spill]] %s1970_s26 }
  0x10   :  { %1993 = sst [smem:[#allocation39_spill]] %s1971_s27 }
  0x11   :  { %33 = vsyncpa [#allocation3], 0 }
  0x12   :  { %34 = vsyncpa [#allocation6], 0 }
  0x13   :  { %35 = vsyncpa [#allocation9], 0 }
  0x14   :  { %36 = vsyncpa [#allocation12], 0 }
  0x15   :  { %37 = vsyncpa [#allocation4], 0  ;;  %s1994_s8 = sld [smem:[#allocation25_spill]] }
  0x1b   :  { %s54_s30 = sshll.u32 %s1994_s8, 4  ;;  %s55_s30 = int_to_ptr.hbm [resolvable:$true] %s54_s30 }
  0x1c   :  { %38 = vsyncpa [#allocation16], 0  ;;  %s1552_s9 = smov [#allocation5]   ;;  %s1995_s10 = sld [smem:[#allocation33_spill]] }
  0x1d   :  { %s56_s5 = sshll.u32 %s1552_s9, 4  ;;  %s1974_s1 = smov 128   ;;  %s57_s5 = int_to_ptr.vmem [resolvable:$true] %s56_s5 }
  0x1e   :  { %s1976_s6 = smov 8   ;;  %s1555_s11 = smov [#allocation8]  }
  0x1f   :  { %62 = dma.hbm_to_vmem [thread:$0]  %s55_s30, 256, %s57_s5, [#allocation6], %s1974_s1, %s1974_s1, %s1976_s6  }
  0x20   :  { %s94_s2 = sshll.u32 %s1555_s11, 4  ;;  %s1556_s3 = smov 512   ;;  %s95_s2 = int_to_ptr.vmem [resolvable:$true] %s94_s2 }
  0x21   :  { %s1557_s7 = smov 32   ;;  %s130_s9 = sshll.u32 %s1961_s17, 4  ;;  %s131_s9 = int_to_ptr.hbm [resolvable:$true] %s130_s9 }
  0x22   :  { %s92_s29 = sshll.u32 %s1995_s10, 4  ;;  %s1558_s28 = smov [#allocation11]   ;;  %s93_s29 = int_to_ptr.hbm [resolvable:$true] %s92_s29 }
  0x23   :  { %100 = dma.hbm_to_vmem [thread:$0]  %s93_s29, 8192, %s95_s2, [#allocation9], %s1556_s3, %s1556_s3, %s1557_s7  }
  0x24   :  { %s132_s0 = sshll.u32 %s1558_s28, 4  ;;  %s1996_s26 = sld [smem:[#allocation24_spill]]  ;;  %s133_s0 = int_to_ptr.vmem [resolvable:$true] %s132_s0 }
  0x25   :  { %138 = dma.hbm_to_vmem [thread:$0]  %s131_s9, 8192, %s133_s0, [#allocation12], %s1556_s3, %s1556_s3, %s1557_s7  }
  0x26   :  { %s1559_s30 = smov [#allocation2]   ;;  %s1997_s6 = sld [smem:[#allocation26_spill]] }
  0x27   :  { %s46_s5 = sshll.u32 %s1559_s30, 4  ;;  %s1998_s4 = sld [smem:[#allocation35_spill]]  ;;  %s47_s5 = int_to_ptr.vmem [resolvable:$true] %s46_s5 }
  0x28   :  { %s1560_s28 = smov [#allocation7]   ;;  %s2000_s27 = smov 128  }
  0x29   :  { %s69_s21 = sshll.u32 %s1560_s28, 4  ;;  %s1561_s3 = smov [#allocation10]   ;;  %s70_s21 = int_to_ptr.vmem [resolvable:$true] %s69_s21 }
  0x2a   :  { %s44_s22 = sshll.u32 %s1996_s26, 4  ;;  %s1999_s26 = smov 8   ;;  %s45_s22 = int_to_ptr.hbm [resolvable:$true] %s44_s22 }
  0x2b   :  { %49 = dma.hbm_to_vmem [thread:$0]  %s45_s22, 128, %s47_s5, [#allocation3]  }
  0x2c   :  { %s67_s29 = sshll.u32 %s1997_s6, 4  ;;  %s109_s7 = sshll.u32 %s1561_s3, 4  ;;  %s68_s29 = int_to_ptr.hbm [resolvable:$true] %s67_s29  ;;  %s110_s7 = int_to_ptr.vmem [resolvable:$true] %s109_s7 }
  0x2d   :  { %s107_s8 = sshll.u32 %s1998_s4, 4  ;;  %s145_s6 = sshll.u32 %s1963_s19, 4  ;;  %s108_s8 = int_to_ptr.hbm [resolvable:$true] %s107_s8  ;;  %s146_s6 = int_to_ptr.hbm [resolvable:$true] %s145_s6 }
  0x2e   :  { %75 = dma.hbm_to_vmem [thread:$0]  %s68_s29, 384, %s70_s21, [#allocation6], %s2000_s27, %s2000_s27, %s1999_s26  }
  0x2f   :  { %115 = dma.hbm_to_vmem [thread:$0]  %s108_s8, 2048, %s110_s7, [#allocation9], %s2000_s27, %s2000_s27, %s1999_s26  }
  0x30   :  { %s1562_s22 = smov [#allocation13]  }
  0x31   :  { %s147_s0 = sshll.u32 %s1562_s22, 4  ;;  %s148_s0 = int_to_ptr.vmem [resolvable:$true] %s147_s0 }
  0x32   :  { %153 = dma.hbm_to_vmem [thread:$0]  %s146_s6, 2048, %s148_s0, [#allocation12], %s2000_s27, %s2000_s27, %s1999_s26  }
  0x33   :  { %1540 = dma.done.wait [#allocation3], 128  }
  0x34   :  { %1541 = vsyncadd [#allocation3], 4294967168 }
  0x35   :  { %1542 = dma.done.wait [#allocation6], 640  }
  0x36   :  { %1543 = vsyncadd [#allocation6], 4294966656 }
  0x37   :  { %1544 = dma.done.wait [#allocation9], 10240  }
  0x38   :  { %1545 = vsyncadd [#allocation9], 4294957056 }
  0x39   :  { %1546 = dma.done.wait [#allocation12], 10240  }
  0x3a   :  { %1547 = vsyncadd [#allocation12], 4294957056  ;;  %v264_v0 = vld [vmem:[#allocation8 + $0x1e0] sm:$0xff]  ;;  %v265_v1 = vld [vmem:[#allocation8 + $0x1e8] sm:$0xff]  ;;  %s2001_s10 = sld [smem:[#allocation34_spill]]  ;;  %vm417_vm0 = vcmask 1043456  }
  0x3b   :  { %v266_v2 = vld [vmem:[#allocation8 + $0x1f0] sm:$0xff]  ;;  %278 = vmatpush.msra.mxu0 %v264_v0  ;;  %298 = vmatpush.msra.mxu1 %v265_v1  ;;  %v260_v3 = vld [vmem:[#allocation8 + $0x1c0] sm:$0xff]  ;;  %v261_v4 = vld [vmem:[#allocation8 + $0x1c8] sm:$0xff]  ;;  %s2002_s11 = sld [smem:[#allocation27_spill]]  ;;  %vm413_vm1 = vcmask 64512   ;;  %vm494_vm2 = vcmask 130048  }
  0x3c   :  { %v262_v5 = vld [vmem:[#allocation8 + $0x1d0] sm:$0xff]  ;;  %318 = vmatpush.msra.mxu2 %v266_v2  ;;  %v256_v6 = vld [vmem:[#allocation8 + $0x1a0] sm:$0xff]  ;;  %v257_v7 = vld [vmem:[#allocation8 + $0x1a8] sm:$0xff]  ;;  %s2003_s2 = sld [smem:[#allocation28_spill]]  ;;  %vm979_vm9 = vcmask 195584   ;;  %s1156_s6 = sshll.u32 %s1969_s25, 4  ;;  %s1157_s6 = int_to_ptr.hbm [resolvable:$true] %s1156_s6 }
  0x3d   :  { %279 = vmatpush.msra.mxu0 %v260_v3  ;;  %299 = vmatpush.msra.mxu1 %v261_v4  ;;  %v258_v8 = vld [vmem:[#allocation8 + $0x1b0] sm:$0xff]  ;;  %v252_v9 = vld [vmem:[#allocation8 + $0x180] sm:$0xff]  ;;  %v253_v10 = vld [vmem:[#allocation8 + $0x188] sm:$0xff]  ;;  %s2004_s3 = sld [smem:[#allocation29_spill]] }
  0x3e   :  { %319 = vmatpush.msra.mxu2 %v262_v5  ;;  %v254_v11 = vld [vmem:[#allocation8 + $0x190] sm:$0xff]  ;;  %v248_v12 = vld [vmem:[#allocation8 + $0x160] sm:$0xff]  ;;  %v249_v13 = vld [vmem:[#allocation8 + $0x168] sm:$0xff]  ;;  %s2005_s0 = sld [smem:[#allocation30_spill]] }
  0x3f   :  { %280 = vmatpush.msra.mxu0 %v256_v6  ;;  %300 = vmatpush.msra.mxu1 %v257_v7  ;;  %v250_v14 = vld [vmem:[#allocation8 + $0x170] sm:$0xff]  ;;  %v244_v15 = vld [vmem:[#allocation8 + $0x140] sm:$0xff]  ;;  %v245_v16 = vld [vmem:[#allocation8 + $0x148] sm:$0xff]  ;;  %s2007_s28 = sld [smem:[#allocation32_spill]] }
  0x40   :  { %320 = vmatpush.msra.mxu2 %v258_v8  ;;  %v246_v17 = vld [vmem:[#allocation8 + $0x150] sm:$0xff]  ;;  %v240_v18 = vld [vmem:[#allocation8 + $0x120] sm:$0xff]  ;;  %v241_v19 = vld [vmem:[#allocation8 + $0x128] sm:$0xff]  ;;  %s2008_s22 = sld [smem:[#allocation36_spill]] }
  0x41   :  { %281 = vmatpush.msra.mxu0 %v252_v9  ;;  %301 = vmatpush.msra.mxu1 %v253_v10  ;;  %v242_v20 = vld [vmem:[#allocation8 + $0x130] sm:$0xff]  ;;  %v236_v21 = vld [vmem:[#allocation8 + $0x100] sm:$0xff]  ;;  %v237_v22 = vld [vmem:[#allocation8 + $0x108] sm:$0xff]  ;;  %s2009_s21 = sld [smem:[#allocation37_spill]] }
  0x42   :  { %321 = vmatpush.msra.mxu2 %v254_v11  ;;  %v238_v23 = vld [vmem:[#allocation8 + $0x110] sm:$0xff]  ;;  %v232_v24 = vld [vmem:[#allocation8 + $0xe0] sm:$0xff]  ;;  %v233_v25 = vld [vmem:[#allocation8 + $0xe8] sm:$0xff]  ;;  %s2010_s29 = sld [smem:[#allocation38_spill]] }
  0x43   :  { %282 = vmatpush.msra.mxu0 %v248_v12  ;;  %302 = vmatpush.msra.mxu1 %v249_v13  ;;  %v234_v26 = vld [vmem:[#allocation8 + $0xf0] sm:$0xff]  ;;  %v228_v27 = vld [vmem:[#allocation8 + $0xc0] sm:$0xff]  ;;  %v229_v28 = vld [vmem:[#allocation8 + $0xc8] sm:$0xff] }
  0x44   :  { %322 = vmatpush.msra.mxu2 %v250_v14  ;;  %v267_v29 = vld [vmem:[#allocation8 + $0x1f8] sm:$0xff]  ;;  %v230_v30 = vld [vmem:[#allocation8 + $0xd0] sm:$0xff]  ;;  %v224_v32 = vld [vmem:[#allocation8 + $0xa0] sm:$0xff] }
  0x45   :  { %283 = vmatpush.msra.mxu0 %v244_v15  ;;  %303 = vmatpush.msra.mxu1 %v245_v16  ;;  %v263_v31 = vld [vmem:[#allocation8 + $0x1d8] sm:$0xff]  ;;  %v225_v33 = vld [vmem:[#allocation8 + $0xa8] sm:$0xff]  ;;  %v226_v34 = vld [vmem:[#allocation8 + $0xb0] sm:$0xff] }
  0x46   :  { %323 = vmatpush.msra.mxu2 %v246_v17  ;;  %338 = vmatpush.msra.mxu3 %v267_v29  ;;  %v220_v35 = vld [vmem:[#allocation8 + $0x80] sm:$0xff]  ;;  %v259_v36 = vld [vmem:[#allocation8 + $0x1b8] sm:$0xff]  ;;  %v221_v37 = vld [vmem:[#allocation8 + $0x88] sm:$0xff] }
  0x47   :  { %284 = vmatpush.msra.mxu0 %v240_v18  ;;  %304 = vmatpush.msra.mxu1 %v241_v19  ;;  %v222_v38 = vld [vmem:[#allocation8 + $0x90] sm:$0xff]  ;;  %v216_v39 = vld [vmem:[#allocation8 + $0x60] sm:$0xff]  ;;  %v217_v40 = vld [vmem:[#allocation8 + $0x68] sm:$0xff] }
  0x48   :  { %324 = vmatpush.msra.mxu2 %v242_v20  ;;  %339 = vmatpush.msra.mxu3 %v263_v31  ;;  %v218_v41 = vld [vmem:[#allocation8 + $0x70] sm:$0xff]  ;;  %v255_v42 = vld [vmem:[#allocation8 + $0x198] sm:$0xff]  ;;  %v212_v43 = vld [vmem:[#allocation8 + $0x40] sm:$0xff]  ;;  %s1166_s17 = sshll.u32 %s2010_s29, 4  ;;  %s1167_s17 = int_to_ptr.hbm [resolvable:$true] %s1166_s17 }
  0x49   :  { %285 = vmatpush.msra.mxu0 %v236_v21  ;;  %305 = vmatpush.msra.mxu1 %v237_v22  ;;  %v213_v44 = vld [vmem:[#allocation8 + $0x48] sm:$0xff]  ;;  %v251_v45 = vld [vmem:[#allocation8 + $0x178] sm:$0xff]  ;;  %v214_v46 = vld [vmem:[#allocation8 + $0x50] sm:$0xff] }
  0x4a   :  { %325 = vmatpush.msra.mxu2 %v238_v23  ;;  %340 = vmatpush.msra.mxu3 %v259_v36  ;;  %v247_v47 = vld [vmem:[#allocation8 + $0x158] sm:$0xff]  ;;  %v208_v48 = vld [vmem:[#allocation8 + $0x20] sm:$0xff]  ;;  %v209_v49 = vld [vmem:[#allocation8 + $0x28] sm:$0xff] }
  0x4b   :  { %286 = vmatpush.msra.mxu0 %v232_v24  ;;  %306 = vmatpush.msra.mxu1 %v233_v25  ;;  %v210_v50 = vld [vmem:[#allocation8 + $0x30] sm:$0xff]  ;;  %v243_v51 = vld [vmem:[#allocation8 + $0x138] sm:$0xff]  ;;  %v204_v52 = vld [vmem:[#allocation8] sm:$0xff] }
  0x4c   :  { %326 = vmatpush.msra.mxu2 %v234_v26  ;;  %341 = vmatpush.msra.mxu3 %v255_v42  ;;  %v205_v53 = vld [vmem:[#allocation8 + $0x8] sm:$0xff]  ;;  %v206_v54 = vld [vmem:[#allocation8 + $0x10] sm:$0xff]  ;;  %v239_v56 = vld [vmem:[#allocation8 + $0x118] sm:$0xff] }
  0x4d   :  { %287 = vmatpush.msra.mxu0 %v228_v27  ;;  %307 = vmatpush.msra.mxu1 %v229_v28  ;;  %v1739_v55 = vld [vmem:[#allocation2] sm:$0xff]  ;;  %v373_v57 = vld [vmem:[#allocation10 + $0x78] sm:$0xff]  ;;  %v371_v61 = vld [vmem:[#allocation10 + $0x68] sm:$0xff] }
  0x4e   :  { %327 = vmatpush.msra.mxu2 %v230_v30  ;;  %342 = vmatpush.msra.mxu3 %v251_v45  ;;  %v235_v58 = vld [vmem:[#allocation8 + $0xf8] sm:$0xff]  ;;  %v372_v59 = vld [vmem:[#allocation10 + $0x70] sm:$0xff]  ;;  %v370_v63 = vld [vmem:[#allocation10 + $0x60] sm:$0xff] }
  0x4f   :  { %288 = vmatpush.msra.mxu0 %v224_v32  ;;  %308 = vmatpush.msra.mxu1 %v225_v33  ;;  %v231_v60 = vld [vmem:[#allocation8 + $0xd8] sm:$0xff]  ;;  %v368_v3 = vld [vmem:[#allocation10 + $0x50] sm:$0xff]  ;;  %v367_v5 = vld [vmem:[#allocation10 + $0x48] sm:$0xff] }
  0x50   :  { %328 = vmatpush.msra.mxu2 %v226_v34  ;;  %343 = vmatpush.msra.mxu3 %v247_v47  ;;  %v227_v62 = vld [vmem:[#allocation8 + $0xb8] sm:$0xff]  ;;  %v366_v7 = vld [vmem:[#allocation10 + $0x40] sm:$0xff]  ;;  %v364_v10 = vld [vmem:[#allocation10 + $0x30] sm:$0xff] }
  0x51   :  { %289 = vmatpush.msra.mxu0 %v220_v35  ;;  %309 = vmatpush.msra.mxu1 %v221_v37  ;;  %v223_v0 = vld [vmem:[#allocation8 + $0x98] sm:$0xff]  ;;  %v363_v11 = vld [vmem:[#allocation10 + $0x28] sm:$0xff]  ;;  %v362_v12 = vld [vmem:[#allocation10 + $0x20] sm:$0xff] }
  0x52   :  { %329 = vmatpush.msra.mxu2 %v222_v38  ;;  %344 = vmatpush.msra.mxu3 %v243_v51  ;;  %v369_v1 = vld [vmem:[#allocation10 + $0x58] sm:$0xff]  ;;  %v360_v14 = vld [vmem:[#allocation10 + $0x10] sm:$0xff]  ;;  %v359_v15 = vld [vmem:[#allocation10 + $0x8] sm:$0xff] }
  0x53   :  { %290 = vmatpush.msra.mxu0 %v216_v39  ;;  %310 = vmatpush.msra.mxu1 %v217_v40  ;;  %v219_v2 = vld [vmem:[#allocation8 + $0x78] sm:$0xff]  ;;  %v358_v16 = vld [vmem:[#allocation10] sm:$0xff]  ;;  %v1751_v18 = vld [vmem:[%s2001_s10] sm:$0xf]  ;;  %s2006_s10 = sld [smem:[#allocation31_spill]] }
  0x54   :  { %330 = vmatpush.msra.mxu2 %v218_v41  ;;  %345 = vmatpush.msra.mxu3 %v239_v56  ;;  %v215_v4 = vld [vmem:[#allocation8 + $0x58] sm:$0xff]  ;;  %v1753_v19 = vld [vmem:[#allocation5 + $0x8] sm:$0xff]  ;;  %v270_v20 = vperm.slane %v1751_v18, 0  ;;  %v271_v21 = vperm.slane %v1751_v18, 1  ;;  %v272_v27 = vperm.slane %v1751_v18, 2  ;;  %v1237_v36 = vld [vmem:[%s2002_s11] sm:$0xff] }
  0x55   :  { %291 = vmatpush.msra.mxu0 %v212_v43  ;;  %311 = vmatpush.msra.mxu1 %v213_v44  ;;  %v211_v6 = vld [vmem:[#allocation8 + $0x38] sm:$0xff]  ;;  %v1238_v39 = vld [vmem:[%s2003_s2] sm:$0xff]  ;;  %s1565_s2 = smov [#allocation17]  }
  0x56   :  { %331 = vmatpush.msra.mxu2 %v214_v46  ;;  %346 = vmatpush.msra.mxu3 %v235_v58  ;;  %v207_v8 = vld [vmem:[#allocation8 + $0x18] sm:$0xff]  ;;  %v1256_v42 = vld [vmem:[%s1956_s12] ss:$0 sm:$0xff]  ;;  %s1177_s4 = sshll.u32 %s1565_s2, 4  ;;  %s1178_s4 = int_to_ptr.vmem [resolvable:$true] %s1177_s4 }
  0x57   :  { %292 = vmatpush.msra.mxu0 %v208_v48  ;;  %312 = vmatpush.msra.mxu1 %v209_v49  ;;  %v365_v9 = vld [vmem:[#allocation10 + $0x38] sm:$0xff]  ;;  %v694_v48 = vld [vmem:[#allocation11 + $0x1e0] sm:$0xff] }
  0x58   :  { %332 = vmatpush.msra.mxu2 %v210_v50  ;;  %347 = vmatpush.msra.mxu3 %v231_v60  ;;  %v361_v13 = vld [vmem:[#allocation10 + $0x18] sm:$0xff] }
  0x59   :  { %293 = vmatpush.msra.mxu0 %v204_v52  ;;  %313 = vmatpush.msra.mxu1 %v205_v53  ;;  %v1745_v17 = vld [vmem:[#allocation5] sm:$0xff]  ;;  %v690_v52 = vld [vmem:[#allocation11 + $0x1c0] sm:$0xff] }
  0x5a   :  { %333 = vmatpush.msra.mxu2 %v206_v54  ;;  %294 = vmatmul.f32.vlgmr.msra.gmra.mxu0 %v1739_v55  ;;  %v697_v49 = vld [vmem:[#allocation11 + $0x1f8] sm:$0xff] }
  0x5b   :  { %314 = vmatmul.f32.vlgmr.msra.gmra.mxu1 %v1739_v55  ;;  %334 = vmatmul.f32.vlgmr.msra.gmra.mxu2 %v1739_v55  ;;  %v693_v53 = vld [vmem:[#allocation11 + $0x1d8] sm:$0xff] }
  0x5c   :  { %378 = vmatpush.msrb.mxu0 %v373_v57  ;;  %348 = vmatpush.msra.mxu3 %v227_v62  ;;  %v682_v62 = vld [vmem:[#allocation11 + $0x180] sm:$0xff] }
  0x5e   :  { %379 = vmatpush.msrb.mxu0 %v372_v59  ;;  %349 = vmatpush.msra.mxu3 %v223_v0  ;;  %v686_v59 = vld [vmem:[#allocation11 + $0x1a0] sm:$0xff]  ;;  %v685_v0 = vld [vmem:[#allocation11 + $0x198] sm:$0xff] }
  0x60   :  { %380 = vmatpush.msrb.mxu0 %v371_v61  ;;  %350 = vmatpush.msra.mxu3 %v219_v2  ;;  %v689_v61 = vld [vmem:[#allocation11 + $0x1b8] sm:$0xff] }
  0x62   :  { %381 = vmatpush.msrb.mxu0 %v370_v63  ;;  %351 = vmatpush.msra.mxu3 %v215_v4 }
  0x64   :  { %382 = vmatpush.msrb.mxu0 %v369_v1  ;;  %352 = vmatpush.msra.mxu3 %v211_v6  ;;  %v678_v1 = vld [vmem:[#allocation11 + $0x160] sm:$0xff]  ;;  %v681_v6 = vld [vmem:[#allocation11 + $0x178] sm:$0xff] }
  0x66   :  { %383 = vmatpush.msrb.mxu0 %v368_v3  ;;  %353 = vmatpush.msra.mxu3 %v207_v8 }
  0x67   :  { %354 = vmatmul.f32.vlgmr.msra.gmra.mxu3 %v1739_v55 }
  0x68   :  { %384 = vmatpush.msrb.mxu0 %v367_v5 }
  0x6a   :  { %385 = vmatpush.msrb.mxu0 %v366_v7  ;;  %v674_v7 = vld [vmem:[#allocation11 + $0x140] sm:$0xff] }
  0x6c   :  { %386 = vmatpush.msrb.mxu0 %v365_v9 }
  0x6e   :  { %387 = vmatpush.msrb.mxu0 %v364_v10 }
  0x70   :  { %388 = vmatpush.msrb.mxu0 %v363_v11  ;;  %v677_v11 = vld [vmem:[#allocation11 + $0x158] sm:$0xff] }
  0x72   :  { %389 = vmatpush.msrb.mxu0 %v362_v12  ;;  %v670_v12 = vld [vmem:[#allocation11 + $0x120] sm:$0xff] }
  0x74   :  { %390 = vmatpush.msrb.mxu0 %v361_v13 }
  0x76   :  { %391 = vmatpush.msrb.mxu0 %v360_v14 }
  0x78   :  { %392 = vmatpush.msrb.mxu0 %v359_v15 }
  0x7a   :  { %393 = vmatpush.msrb.mxu0 %v358_v16  ;;  %v673_v16 = vld [vmem:[#allocation11 + $0x138] sm:$0xff] }
  0x7b   :  { %394 = vmatmul.f32.vlgmr.msrb.gmra.mxu0 %v1745_v17 }
  0x7c   :  { %777 = vmatpush.msra.mxu0 %v697_v49 }
  0x7e   :  { %778 = vmatpush.msra.mxu0 %v693_v53 }
  0x80   :  { %779 = vmatpush.msra.mxu0 %v689_v61 }
  0x82   :  { %780 = vmatpush.msra.mxu0 %v685_v0  ;;  %v696_v0 = vld [vmem:[#allocation11 + $0x1f0] sm:$0xff] }
  0x83   :  { %397 = vmatmul.f32.gmra.mxu0 %v1753_v19 }
  0x84   :  { %781 = vmatpush.msra.mxu0 %v681_v6  ;;  %v695_v6 = vld [vmem:[#allocation11 + $0x1e8] sm:$0xff] }
  0x86   :  { %782 = vmatpush.msra.mxu0 %v677_v11  ;;  %v684_v11 = vld [vmem:[#allocation11 + $0x190] sm:$0xff] }
  0x88   :  { %783 = vmatpush.msra.mxu0 %v673_v16 }
  0xd7   :  { %v295_v22 = vpop.f32.mrf.mxu0 }
  0xd8   :  { %v296_v23 = vadd.f32 %v295_v22, %v270_v20  ;;  %v315_v24 = vpop.f32.mrf.mxu1  ;;  %v666_v20 = vld [vmem:[#allocation11 + $0x100] sm:$0xff] }
  0xd9   :  { %v316_v25 = vadd.f32 %v315_v24, %v271_v21 }
  0xdb   :  { %v401_v26 = vpack.c.bf16 %v316_v25, %v296_v23  ;;  %v669_v23 = vld [vmem:[#allocation11 + $0x118] sm:$0xff]  ;;  %v662_v25 = vld [vmem:[#allocation11 + $0xe0] sm:$0xff] }
  0xdc   :  { %784 = vmatpush.msra.mxu0 %v669_v23  ;;  %v672_v23 = vld [vmem:[#allocation11 + $0x130] sm:$0xff] }
  0xdd   :  { %v409_v28 = vunpack.c.l.b16 %v401_v26  ;;  %v410_v29 = vunpack.c.h.b16 %v401_v26 }
  0xde   :  { %v335_v30 = vpop.f32.mrf.mxu2 }
  0xdf   :  { %v336_v31 = vadd.f32 %v335_v30, %v272_v27  ;;  %v411_v32 = vpack.c.b16 %v409_v28, %v409_v28  ;;  %v412_v33 = vpack.c.b16 %v410_v29, %v410_v29  ;;  %v665_v28 = vld [vmem:[#allocation11 + $0xf8] sm:$0xff]  ;;  %v658_v30 = vld [vmem:[#allocation11 + $0xc0] sm:$0xff] }
  0xe0   :  { %785 = vmatpush.msra.mxu0 %v665_v28 }
  0xe1   :  { %v402_v34 = vpack.c.bf16 %v336_v31, %v336_v31  ;;  %v419_v35 = vsel %vm417_vm0, %v411_v32, 0  ;;  %v422_v37 = vsel %vm417_vm0, %v412_v33, 0 }
  0xe2   :  { %431 = vmatpush.bf16.msrb.mxu1 %v419_v35  ;;  %445 = vmatpush.bf16.msrb.mxu2 %v422_v37 }
  0xe3   :  { %v461_v38 = vsel %vm417_vm0, %v402_v34, 0  ;;  %v661_v34 = vld [vmem:[#allocation11 + $0xd8] sm:$0xff] }
  0xe4   :  { %470 = vmatpush.bf16.msrb.mxu3 %v461_v38  ;;  %786 = vmatpush.msra.mxu0 %v661_v34 }
  0xe5   :  { %1208 = vmatmul.msk.bf16.vlgmr.msrb.gmra.mxu1 %vm413_vm1, %v1237_v36  ;;  %1209 = vmatmul.msk.bf16.vlgmr.msrb.gmra.mxu2 %vm413_vm1, %v1237_v36  ;;  %v654_v36 = vld [vmem:[#allocation11 + $0xa0] sm:$0xff] }
  0xe7   :  { %1214 = vmatmul.msk.bf16.vlgmr.msrb.gmra.mxu3 %vm413_vm1, %v1238_v39  ;;  %v657_v39 = vld [vmem:[#allocation11 + $0xb8] sm:$0xff] }
  0xe8   :  { %708 = vmatpush.msra.mxu3 %v694_v48  ;;  %787 = vmatpush.msra.mxu0 %v657_v39 }
  0xea   :  { %v1768_v40 = vpop.f32.mrf.mxu3  ;;  %709 = vmatpush.msra.mxu3 %v690_v52  ;;  %v645_v52 = vld [vmem:[#allocation11 + $0x58] sm:$0xff] }
  0xec   :  { %710 = vmatpush.msra.mxu3 %v686_v59 }
  0xee   :  { %711 = vmatpush.msra.mxu3 %v682_v62 }
  0xf0   :  { %712 = vmatpush.msra.mxu3 %v678_v1  ;;  %v634_v1 = vld [vmem:[#allocation11] sm:$0xff] }
  0xf2   :  { %713 = vmatpush.msra.mxu3 %v674_v7  ;;  %v692_v7 = vld [vmem:[#allocation11 + $0x1d0] sm:$0xff] }
  0xf4   :  { %714 = vmatpush.msra.mxu3 %v670_v12  ;;  %v683_v12 = vld [vmem:[#allocation11 + $0x188] sm:$0xff] }
  0xf6   :  { %715 = vmatpush.msra.mxu3 %v666_v20  ;;  %v676_v20 = vld [vmem:[#allocation11 + $0x150] sm:$0xff] }
  0xf8   :  { %v395_v41 = vpop.f32.mrf.mxu0  ;;  %716 = vmatpush.msra.mxu3 %v662_v25 }
  0xf9   :  { %v396_v44 = vadd.f32 %v1256_v42, %v395_v41  ;;  %v650_v41 = vld [vmem:[#allocation11 + $0x80] sm:$0xff] }
  0xfa   :  { %717 = vmatpush.msra.mxu3 %v658_v30  ;;  %v663_v30 = vld [vmem:[#allocation11 + $0xe8] sm:$0xff] }
  0xfc   :  { %718 = vmatpush.msra.mxu3 %v654_v36  ;;  %v659_v36 = vld [vmem:[#allocation11 + $0xc8] sm:$0xff] }
  0xfe   :  { %719 = vmatpush.msra.mxu3 %v650_v41 }
 0x100   :  { %v398_v50 = vpop.f32.mrf.mxu0 }
 0x101   :  { %v399_v54 = vadd.f32 %v1256_v42, %v398_v50  ;;  %v653_v42 = vld [vmem:[#allocation11 + $0x98] sm:$0xff]  ;;  %v642_v50 = vld [vmem:[#allocation11 + $0x40] sm:$0xff] }
 0x102   :  { %788 = vmatpush.msra.mxu0 %v653_v42  ;;  %v655_v42 = vld [vmem:[#allocation11 + $0xa8] sm:$0xff] }
 0x162   :  { %v433_v43 = vpop.f32.mrf.mxu1 }
 0x168   :  { %v447_v29 = vpop.f32.mrf.mxu2 }
 0x16a   :  { %v472_v45 = vpop.f32.mrf.mxu3  ;;  %v435_v57 = vpop.f32.mrf.mxu1 }
 0x16b   :  { %v477_v46 = vadd.f32 %v472_v45, %v433_v43  ;;  %v646_v45 = vld [vmem:[#allocation11 + $0x60] sm:$0xff] }
 0x16c   :  { %720 = vmatpush.msra.mxu3 %v646_v45  ;;  %v651_v45 = vld [vmem:[#allocation11 + $0x88] sm:$0xff] }
 0x16d   :  { %v1773_v47 = vadd.f32 %v477_v46, %v396_v44  ;;  %v649_v46 = vld [vmem:[#allocation11 + $0x78] sm:$0xff] }
 0x16e   :  { %789 = vmatpush.msra.mxu0 %v649_v46  ;;  %721 = vmatpush.msra.mxu3 %v642_v50  ;;  %v648_v46 = vld [vmem:[#allocation11 + $0x70] sm:$0xff] }
 0x16f   :  { %v481_v51 = vsub.f32 0.0, %v1773_v47  ;;  %v581_v2 = vmul.f32 %v1773_v47, %v1773_v47  ;;  %v644_v50 = vld [vmem:[#allocation11 + $0x50] sm:$0xff] }
 0x170   :  { %790 = vmatpush.msra.mxu0 %v645_v52 }
 0x171   :  { %v483_v56 = vmul.f32 1.442695, %v481_v51 }
 0x172   :  { %v474_v58 = vpop.f32.mrf.mxu3 }
 0x173   :  { %v478_v60 = vadd.f32 %v474_v58, %v435_v57  ;;  %1266 = vpow2.f32 %v483_v56  ;;  %v449_v57 = vpop.f32.mrf.mxu2  ;;  %v641_v58 = vld [vmem:[#allocation11 + $0x38] sm:$0xff] }
 0x174   :  { %791 = vmatpush.msra.mxu0 %v641_v58  ;;  %v636_v58 = vld [vmem:[#allocation11 + $0x10] sm:$0xff] }
 0x175   :  { %v1776_v63 = vadd.f32 %v478_v60, %v399_v54  ;;  %v638_v54 = vld [vmem:[#allocation11 + $0x20] sm:$0xff] }
 0x176   :  { %722 = vmatpush.msra.mxu3 %v638_v54  ;;  %v640_v54 = vld [vmem:[#allocation11 + $0x30] sm:$0xff] }
 0x177   :  { %v482_v3 = vsub.f32 0.0, %v1776_v63  ;;  %v573_v4 = vadd.f32 %v1776_v63, %v1773_v47  ;;  %v582_v5 = vmul.f32 %v1776_v63, %v1776_v63 }
 0x178   :  { %723 = vmatpush.msra.mxu3 %v634_v1  ;;  %v814_v1 = vld [vmem:[#allocation13 + $0x70] sm:$0xff] }
 0x179   :  { %v574_v8 = vrot.slane %v573_v4, 4  ;;  %v583_v9 = vadd.f32 %v582_v5, %v581_v2  ;;  %v485_v10 = vmul.f32 1.442695, %v482_v3  ;;  %v1267_v13 = vpop.eup %1266  ;;  %v637_v2 = vld [vmem:[#allocation11 + $0x18] sm:$0xff]  ;;  %v203_v5 = vld [vmem:[%s2004_s3] sm:$0xf] }
 0x17a   :  { %v487_v24 = vadd.f32 1.0, %v1267_v13  ;;  %792 = vmatpush.msra.mxu0 %v637_v2  ;;  %v680_v13 = vld [vmem:[#allocation11 + $0x170] sm:$0xff]  ;;  %v813_v2 = vld [vmem:[#allocation13 + $0x68] sm:$0xff] }
 0x17b   :  { %v575_v14 = vadd.f32 %v574_v8, %v573_v4  ;;  %v584_v15 = vrot.slane %v583_v9, 4  ;;  %1268 = vpow2.f32 %v485_v10  ;;  %v691_v8 = vld [vmem:[#allocation11 + $0x1c8] sm:$0xff] }
 0x17c   :  { %1270 = vrcp.f32 %v487_v24  ;;  %v687_v10 = vld [vmem:[#allocation11 + $0x1a8] sm:$0xff] }
 0x17d   :  { %v576_v21 = vrot.slane %v575_v14, 2  ;;  %v585_v22 = vadd.f32 %v584_v15, %v583_v9  ;;  %v688_v9 = vld [vmem:[#allocation11 + $0x1b0] sm:$0xff]  ;;  %v679_v15 = vld [vmem:[#allocation11 + $0x168] sm:$0xff] }
 0x17e   :  { %v671_v24 = vld [vmem:[#allocation11 + $0x128] sm:$0xff] }
 0x17f   :  { %v577_v26 = vadd.f32 %v576_v21, %v575_v14  ;;  %v586_v27 = vrot.slane %v585_v22, 2  ;;  %v675_v21 = vld [vmem:[#allocation11 + $0x148] sm:$0xff] }
 0x181   :  { %v1269_v31 = vpop.eup %1268  ;;  %v578_v32 = vrot.slane %v577_v26, 1  ;;  %v587_v33 = vadd.f32 %v586_v27, %v585_v22  ;;  %v667_v27 = vld [vmem:[#allocation11 + $0x108] sm:$0xff] }
 0x182   :  { %v488_v35 = vadd.f32 1.0, %v1269_v31  ;;  %v1271_v51 = vpop.eup %1270 }
 0x183   :  { %v579_v37 = vadd.f32 %v578_v32, %v577_v26  ;;  %v588_v38 = vrot.slane %v587_v33, 1  ;;  %v491_v60 = vmul.f32 %v1271_v51, %v447_v29  ;;  %v668_v26 = vld [vmem:[#allocation11 + $0x110] sm:$0xff] }
 0x184   :  { %1272 = vrcp.f32 %v488_v35  ;;  %v664_v29 = vld [vmem:[#allocation11 + $0xf0] sm:$0xff] }
 0x185   :  { %v1785_v43 = vmul.f32 0.0625, %v579_v37  ;;  %v589_v44 = vadd.f32 %v588_v38, %v587_v33  ;;  %v660_v32 = vld [vmem:[#allocation11 + $0xd0] sm:$0xff] }
 0x186   :  { %v1257_v35 = vld [vmem:[%s1959_s15] ss:$0 sm:$0xff]  ;;  %s1563_s15 = smov [#allocation14]  }
 0x187   :  { %v590_v48 = vmul.f32 0.0625, %v589_v44  ;;  %v591_v49 = vmul.f32 %v1785_v43, %v1785_v43  ;;  %v594_v33 = vsub.f32 %v1773_v47, %v1785_v43  ;;  %v595_v34 = vsub.f32 %v1776_v63, %v1785_v43  ;;  %v656_v38 = vld [vmem:[#allocation11 + $0xb0] sm:$0xff] }
 0x188   :  { %v1258_v47 = vld [vmem:[%s1960_s16] ss:$0 sm:$0xff]  ;;  %s1154_s16 = sshll.u32 %s1563_s15, 4  ;;  %s1155_s16 = int_to_ptr.vmem [resolvable:$true] %s1154_s16 }
 0x189   :  { %v592_v53 = vsub.f32 %v590_v48, %v591_v49  ;;  %v652_v63 = vld [vmem:[#allocation11 + $0x90] sm:$0xff]  ;;  %v647_v48 = vld [vmem:[#allocation11 + $0x68] sm:$0xff] }
 0x18a   :  { %v1273_v56 = vpop.eup %1272 }
 0x18b   :  { %v593_v59 = vmax.f32 %v592_v53, 0.0  ;;  %v492_v61 = vmul.f32 %v1273_v56, %v449_v57  ;;  %v511_v62 = vpack.c.bf16 %v1273_v56, %v1271_v51  ;;  %v643_v51 = vld [vmem:[#allocation11 + $0x48] sm:$0xff] }
 0x18c   :  { %v639_v56 = vld [vmem:[#allocation11 + $0x28] sm:$0xff] }
 0x18d   :  { %v596_v3 = vadd.f32 1e-05, %v593_v59  ;;  %v493_v4 = vpack.c.bf16 %v492_v61, %v491_v60  ;;  %519 = vmatpush.bf16.msra.mxu2 %v511_v62  ;;  %v635_v61 = vld [vmem:[#allocation11 + $0x8] sm:$0xff] }
 0x18f   :  { %1274 = vrsqrt.f32 %v596_v3  ;;  %505 = vmatpush.bf16.msra.mxu1 %v493_v4  ;;  %vm603_vm4 = vweird.f32 %v596_v3  ;;  %v811_v4 = vld [vmem:[#allocation13 + $0x58] sm:$0xff] }
 0x190   :  { %1216 = vmatmul.msk.bf16.vlgmr.msra.gmra.mxu2 %vm494_vm2, %v203_v5 }
 0x191   :  { %754 = vmatpush.msrb.mxu2 %v696_v0 }
 0x192   :  { %1215 = vmatmul.msk.bf16.vlgmr.msra.gmra.mxu1 %vm494_vm2, %v203_v5  ;;  %v809_v5 = vld [vmem:[#allocation13 + $0x48] sm:$0xff] }
 0x193   :  { %731 = vmatpush.msrb.mxu1 %v695_v6  ;;  %755 = vmatpush.msrb.mxu2 %v692_v7  ;;  %v808_v6 = vld [vmem:[#allocation13 + $0x40] sm:$0xff]  ;;  %v807_v7 = vld [vmem:[#allocation13 + $0x38] sm:$0xff] }
 0x195   :  { %732 = vmatpush.msrb.mxu1 %v691_v8  ;;  %756 = vmatpush.msrb.mxu2 %v688_v9  ;;  %v1275_v14 = vpop.eup %1274  ;;  %v806_v9 = vld [vmem:[#allocation13 + $0x30] sm:$0xff] }
 0x196   :  { %v598_v16 = vmul.f32 %v1275_v14, %v596_v3  ;;  %vm604_vm3 = vweird.f32 %v1275_v14  ;;  %v812_v3 = vld [vmem:[#allocation13 + $0x60] sm:$0xff] }
 0x197   :  { %733 = vmatpush.msrb.mxu1 %v687_v10  ;;  %757 = vmatpush.msrb.mxu2 %v684_v11  ;;  %vm605_vm5 = vmor %vm603_vm4, %vm604_vm3  ;;  %v805_v11 = vld [vmem:[#allocation13 + $0x28] sm:$0xff] }
 0x198   :  { %v599_v22 = vmul.f32 %v1275_v14, %v598_v16  ;;  %v273_v16 = vperm.slane %v1751_v18, 3 }
 0x199   :  { %734 = vmatpush.msrb.mxu1 %v683_v12  ;;  %758 = vmatpush.msrb.mxu2 %v680_v13  ;;  %v804_v13 = vld [vmem:[#allocation13 + $0x20] sm:$0xff] }
 0x19a   :  { %v600_v25 = vmul.f32 0.5, %v599_v22  ;;  %v801_v22 = vld [vmem:[#allocation13 + $0x8] sm:$0xff] }
 0x19b   :  { %735 = vmatpush.msrb.mxu1 %v679_v15  ;;  %759 = vmatpush.msrb.mxu2 %v676_v20  ;;  %v802_v20 = vld [vmem:[#allocation13 + $0x10] sm:$0xff] }
 0x19c   :  { %v601_v28 = vsub.f32 1.5, %v600_v25 }
 0x19d   :  { %736 = vmatpush.msrb.mxu1 %v675_v21  ;;  %760 = vmatpush.msrb.mxu2 %v672_v23 }
 0x19e   :  { %v602_v31 = vmul.f32 %v1275_v14, %v601_v28 }
 0x19f   :  { %737 = vmatpush.msrb.mxu1 %v671_v24  ;;  %761 = vmatpush.msrb.mxu2 %v668_v26  ;;  %v356_v24 = vadd.f32 %v1768_v40, %v273_v16  ;;  %v800_v26 = vld [vmem:[#allocation13] sm:$0xff]  ;;  %v1832_v40 = vld [vmem:[%s1962_s18] sm:$0xf] }
 0x1a0   :  { %v606_v37 = vsel %vm605_vm5, %v1275_v14, %v602_v31  ;;  %v803_v14 = vld [vmem:[#allocation13 + $0x18] sm:$0xff] }
 0x1a1   :  { %738 = vmatpush.msrb.mxu1 %v667_v27  ;;  %762 = vmatpush.msrb.mxu2 %v664_v29  ;;  %v607_v39 = vmul.f32 %v606_v37, %v594_v33  ;;  %v608_v41 = vmul.f32 %v606_v37, %v595_v34  ;;  %v1820_v27 = vld [vmem:[#allocation7] sm:$0xff]  ;;  %v1834_v34 = vld [vmem:[#allocation7 + $0x8] sm:$0xff]  ;;  %v703_v37 = vperm.slane %v1832_v40, 3 }
 0x1a3   :  { %739 = vmatpush.msrb.mxu1 %v663_v30  ;;  %763 = vmatpush.msrb.mxu2 %v660_v32  ;;  %v612_v43 = vmul.f32 %v1257_v35, %v607_v39  ;;  %v613_v44 = vmul.f32 %v1257_v35, %v608_v41 }
 0x1a5   :  { %740 = vmatpush.msrb.mxu1 %v659_v36  ;;  %764 = vmatpush.msrb.mxu2 %v656_v38  ;;  %v617_v49 = vadd.f32 %v1258_v47, %v612_v43  ;;  %v618_v53 = vadd.f32 %v1258_v47, %v613_v44  ;;  %v1842_v43 = vld [vmem:[#allocation7 + $0x10] sm:$0xff] }
 0x1a7   :  { %741 = vmatpush.msrb.mxu1 %v655_v42  ;;  %765 = vmatpush.msrb.mxu2 %v652_v63  ;;  %v619_v52 = vmax.f32 %v617_v49, 0.0  ;;  %v620_v60 = vmax.f32 %v618_v53, 0.0 }
 0x1a9   :  { %742 = vmatpush.msrb.mxu1 %v651_v45  ;;  %766 = vmatpush.msrb.mxu2 %v648_v46  ;;  %v621_v57 = vmin.f32 %v619_v52, 6.0  ;;  %v622_v62 = vmin.f32 %v620_v60, 6.0  ;;  %v700_v52 = vperm.slane %v1832_v40, 0 }
 0x1ab   :  { %743 = vmatpush.msrb.mxu1 %v647_v48  ;;  %767 = vmatpush.msrb.mxu2 %v644_v50  ;;  %v1805_v59 = vadd.f32 %v621_v57, %v1745_v17  ;;  %v1812_v0 = vadd.f32 %v622_v62, %v1753_v19  ;;  %v815_v17 = vld [vmem:[#allocation13 + $0x78] sm:$0xff]  ;;  %v810_v19 = vld [vmem:[#allocation13 + $0x50] sm:$0xff]  ;;  %v701_v57 = vperm.slane %v1832_v40, 1 }
 0x1ac   :  { %820 = vmatpush.msrb.mxu3 %v815_v17 }
 0x1ad   :  { %744 = vmatpush.msrb.mxu1 %v643_v51  ;;  %768 = vmatpush.msrb.mxu2 %v640_v54  ;;  %v702_v54 = vperm.slane %v1832_v40, 2 }
 0x1ae   :  { %724 = vmatmul.f32.vlgmr.msra.gmra.mxu3 %v1805_v59  ;;  %793 = vmatmul.f32.vlgmr.msra.gmra.mxu0 %v1805_v59 }
 0x1af   :  { %745 = vmatpush.msrb.mxu1 %v639_v56  ;;  %769 = vmatpush.msrb.mxu2 %v636_v58 }
 0x1b0   :  { %770 = vmatmul.f32.vlgmr.msrb.gmra.mxu2 %v1805_v59  ;;  %821 = vmatpush.msrb.mxu3 %v814_v1 }
 0x1b1   :  { %746 = vmatpush.msrb.mxu1 %v635_v61 }
 0x1b2   :  { %747 = vmatmul.f32.vlgmr.msrb.gmra.mxu1 %v1805_v59  ;;  %822 = vmatpush.msrb.mxu3 %v813_v2 }
 0x1b4   :  { %823 = vmatpush.msrb.mxu3 %v812_v3 }
 0x1b6   :  { %727 = vmatmul.f32.gmra.mxu3 %v1812_v0  ;;  %796 = vmatmul.f32.gmra.mxu0 %v1812_v0 }
 0x1b7   :  { %824 = vmatpush.msrb.mxu3 %v811_v4 }
 0x1b8   :  { %773 = vmatmul.f32.gmra.mxu2 %v1812_v0 }
 0x1b9   :  { %825 = vmatpush.msrb.mxu3 %v810_v19 }
 0x1ba   :  { %750 = vmatmul.f32.gmra.mxu1 %v1812_v0 }
 0x1bb   :  { %826 = vmatpush.msrb.mxu3 %v809_v5 }
 0x1bd   :  { %827 = vmatpush.msrb.mxu3 %v808_v6 }
 0x1bf   :  { %828 = vmatpush.msrb.mxu3 %v807_v7 }
 0x1c1   :  { %829 = vmatpush.msrb.mxu3 %v806_v9 }
 0x1c3   :  { %830 = vmatpush.msrb.mxu3 %v805_v11 }
 0x1c5   :  { %831 = vmatpush.msrb.mxu3 %v804_v13 }
 0x1c7   :  { %832 = vmatpush.msrb.mxu3 %v803_v14 }
 0x1c9   :  { %833 = vmatpush.msrb.mxu3 %v802_v20 }
 0x1cb   :  { %834 = vmatpush.msrb.mxu3 %v801_v22 }
 0x1cd   :  { %835 = vmatpush.msrb.mxu3 %v800_v26 }
 0x1ce   :  { %836 = vmatmul.f32.vlgmr.msrb.gmra.mxu3 %v1820_v27 }
 0x1d6   :  { %839 = vmatmul.f32.gmra.mxu3 %v1834_v34 }
 0x1de   :  { %842 = vmatmul.f32.gmra.mxu3 %v1842_v43 }
 0x20f   :  { %v507_v8 = vpop.f32.mrf.mxu1 }
 0x213   :  { %v521_v10 = vpop.f32.mrf.mxu2 }
 0x214   :  { %v522_v12 = vadd.f32 1e-06, %v521_v10 }
 0x216   :  { %1276 = vrcp.f32 %v522_v12 }
 0x217   :  { %v509_v15 = vpop.f32.mrf.mxu1 }
 0x21b   :  { %v523_v21 = vpop.f32.mrf.mxu2 }
 0x21c   :  { %v1277_v23 = vpop.eup %1276 }
 0x21d   :  { %v526_v25 = vmul.f32 %v1277_v23, %v507_v8  ;;  %v1239_v23 = vld [vmem:[%s2005_s0] sm:$0xff] }
 0x21f   :  { %v1822_v28 = vadd.f32 %v526_v25, %v356_v24  ;;  %v1240_v25 = vld [vmem:[%s2006_s10] sm:$0xff] }
 0x221   :  { %v530_v29 = vrot.slane %v1822_v28, 4  ;;  %v537_v18 = vmul.f32 %v1822_v28, %v1822_v28 }
 0x223   :  { %v531_v30 = vadd.f32 %v530_v29, %v1822_v28  ;;  %v538_v31 = vrot.slane %v537_v18, 4 }
 0x225   :  { %v532_v32 = vrot.slane %v531_v30, 2  ;;  %v539_v33 = vadd.f32 %v538_v31, %v537_v18  ;;  %v1264_v31 = vld [vmem:[%s1957_s13] ss:$0 sm:$0xff] }
 0x227   :  { %v533_v35 = vadd.f32 %v532_v32, %v531_v30  ;;  %v540_v36 = vrot.slane %v539_v33, 2 }
 0x229   :  { %v534_v38 = vrot.slane %v533_v35, 1  ;;  %v541_v39 = vadd.f32 %v540_v36, %v539_v33  ;;  %v628_v33 = vld [vmem:[%s2005_s0 + $0x8] sm:$0xf]  ;;  %v1265_v36 = vld [vmem:[%s1958_s14] ss:$0 sm:$0xff]  ;;  %s2011_s14 = sld [smem:[#allocation39_spill]] }
 0x22b   :  { %v535_v41 = vadd.f32 %v534_v38, %v533_v35  ;;  %v542_v42 = vrot.slane %v541_v39, 1  ;;  %v794_v47 = vpop.f32.mrf.mxu0  ;;  %v631_v38 = vld [vmem:[%s2006_s10 + $0x8] sm:$0xf]  ;;  %s1564_s10 = smov [#allocation15]  }
 0x22c   :  { %v1840_v63 = vadd.f32 %v794_v47, %v703_v37  ;;  %s1164_s30 = sshll.u32 %s1564_s10, 4  ;;  %s1165_s30 = int_to_ptr.vmem [resolvable:$true] %s1164_s30 }
 0x22d   :  { %v536_v44 = vmul.f32 0.125, %v535_v41  ;;  %v543_v45 = vadd.f32 %v542_v42, %v541_v39  ;;  %v855_v39 = vunpack.c.l.b16 %v628_v33  ;;  %v915_v41 = vunpack.c.l.b16 %v631_v38 }
 0x22f   :  { %v748_v46 = vpop.f32.mrf.mxu1  ;;  %v544_v48 = vmul.f32 0.125, %v543_v45  ;;  %v545_v49 = vmul.f32 %v536_v44, %v536_v44  ;;  %v548_v30 = vsub.f32 %v1822_v28, %v536_v44  ;;  %v857_v44 = vpack.c.b16 %v855_v39, %v855_v39 }
 0x230   :  { %v749_v17 = vadd.f32 %v748_v46, %v701_v57  ;;  %v917_v45 = vpack.c.b16 %v915_v41, %v915_v41 }
 0x231   :  { %v725_v50 = vpop.f32.mrf.mxu3  ;;  %v546_v51 = vsub.f32 %v544_v48, %v545_v49 }
 0x232   :  { %v726_v60 = vadd.f32 %v725_v50, %v700_v52 }
 0x233   :  { %v771_v53 = vpop.f32.mrf.mxu2  ;;  %v547_v56 = vmax.f32 %v546_v51, 0.0  ;;  %v1874_v49 = vpop.f32.mrf.mxu0 }
 0x234   :  { %v772_v61 = vadd.f32 %v771_v53, %v702_v54  ;;  %v846_v2 = vpack.c.bf16 %v749_v17, %v726_v60 }
 0x235   :  { %v549_v58 = vadd.f32 1e-05, %v547_v56 }
 0x236   :  { %v847_v5 = vpack.c.bf16 %v772_v61, %v772_v61  ;;  %v860_v10 = vunpack.c.l.b16 %v846_v2  ;;  %v861_v11 = vunpack.c.h.b16 %v846_v2 }
 0x237   :  { %v751_v62 = vpop.f32.mrf.mxu1  ;;  %1278 = vrsqrt.f32 %v549_v58  ;;  %vm556_vm7 = vweird.f32 %v549_v58 }
 0x238   :  { %v752_v3 = vadd.f32 %v751_v62, %v701_v57  ;;  %v920_v15 = vunpack.c.l.b16 %v847_v5 }
 0x239   :  { %v728_v1 = vpop.f32.mrf.mxu3 }
 0x23a   :  { %v729_v4 = vadd.f32 %v728_v1, %v700_v52 }
 0x23b   :  { %v774_v19 = vpop.f32.mrf.mxu2 }
 0x23c   :  { %v775_v6 = vadd.f32 %v774_v19, %v702_v54  ;;  %v848_v7 = vpack.c.bf16 %v752_v3, %v729_v4  ;;  %v1259_v54 = vld [vmem:[%s1964_s20] ss:$0 sm:$0xff]  ;;  %s1179_s20 = sshll.u32 %s2011_s14, 4  ;;  %s1180_s20 = int_to_ptr.hbm [resolvable:$true] %s1179_s20 }
 0x23d   :  { %v1279_v9 = vpop.eup %1278 }
 0x23e   :  { %v849_v8 = vpack.c.bf16 %v775_v6, %v775_v6  ;;  %v862_v12 = vunpack.c.l.b16 %v848_v7  ;;  %v863_v13 = vunpack.c.h.b16 %v848_v7  ;;  %v551_v14 = vmul.f32 %v1279_v9, %v549_v58 }
 0x23f   :  { %vm557_vm6 = vweird.f32 %v1279_v9 }
 0x240   :  { %v921_v16 = vunpack.c.l.b16 %v849_v8  ;;  %v864_v20 = vpack.c.b16 %v862_v12, %v860_v10  ;;  %v865_v21 = vpack.c.b16 %v863_v13, %v861_v11  ;;  %v552_v24 = vmul.f32 %v1279_v9, %v551_v14  ;;  %vm558_vm8 = vmor %vm556_vm7, %vm557_vm6 }
 0x242   :  { %v922_v22 = vpack.c.b16 %v921_v16, %v920_v15  ;;  %881 = vmatpush.bf16.msra.mxu1 %v864_v20  ;;  %899 = vmatpush.bf16.msra.mxu2 %v865_v21  ;;  %v553_v26 = vmul.f32 0.5, %v552_v24 }
 0x244   :  { %937 = vmatpush.bf16.msrb.mxu0 %v922_v22  ;;  %v554_v29 = vsub.f32 1.5, %v553_v26 }
 0x245   :  { %1221 = vmatmul.msk.bf16.vlgmr.msra.gmra.mxu1 %vm494_vm2, %v1239_v23  ;;  %1223 = vmatmul.msk.bf16.vlgmr.msra.gmra.mxu2 %vm494_vm2, %v1239_v23 }
 0x246   :  { %v555_v18 = vmul.f32 %v1279_v9, %v554_v29 }
 0x247   :  { %1229 = vmatmul.msk.bf16.vlgmr.msrb.gmra.mxu0 %vm494_vm2, %v1240_v25 }
 0x248   :  { %v559_v32 = vsel %vm558_vm8, %v1279_v9, %v555_v18 }
 0x249   :  { %v560_v35 = vmul.f32 %v559_v32, %v548_v30 }
 0x24b   :  { %v564_v28 = vmul.f32 %v1264_v31, %v560_v35 }
 0x24d   :  { %v568_v42 = vadd.f32 %v1265_v36, %v564_v28 }
 0x24f   :  { %v569_v47 = vmax.f32 %v568_v42, 0.0 }
 0x251   :  { %v570_v46 = vmin.f32 %v569_v47, 6.0  ;;  %v837_v50 = vpop.f32.mrf.mxu3 }
 0x252   :  { %v838_v58 = vadd.f32 %v1259_v54, %v837_v50 }
 0x253   :  { %v623_v48 = vadd.f32 %v570_v46, %v1739_v55 }
 0x255   :  { %1222 = vmatmul.msk.bf16.gmra.mxu1 %vm494_vm2, %v857_v44  ;;  %1224 = vmatmul.msk.bf16.gmra.mxu2 %vm494_vm2, %v857_v44  ;;  %1143 = vst [vmem:[#allocation14] sm:$0xff] %v623_v48 }
 0x256   :  { %1159 = dma.vmem_to_hbm [thread:$0]  %s1155_s16, 128, %s1157_s6, [#allocation4]  }
 0x257   :  { %1230 = vmatmul.msk.bf16.gmra.mxu0 %vm494_vm2, %v917_v45 }
 0x259   :  { %v840_v53 = vpop.f32.mrf.mxu3 }
 0x25a   :  { %v841_v55 = vadd.f32 %v1259_v54, %v840_v53 }
 0x261   :  { %v843_v2 = vpop.f32.mrf.mxu3 }
 0x262   :  { %v844_v19 = vadd.f32 %v1259_v54, %v843_v2 }
 0x2c2   :  { %v883_v51 = vpop.f32.mrf.mxu1 }
 0x2c4   :  { %v939_v52 = vpop.f32.mrf.mxu0 }
 0x2c5   :  { %v948_v60 = vadd.f32 %v939_v52, %v883_v51 }
 0x2c7   :  { %v1883_v1 = vadd.f32 %v948_v60, %v838_v58 }
 0x2c8   :  { %v1879_v56 = vpop.f32.mrf.mxu2 }
 0x2c9   :  { %v954_v6 = vsub.f32 0.0, %v1883_v1  ;;  %v1088_v11 = vmul.f32 %v1883_v1, %v1883_v1 }
 0x2ca   :  { %v885_v57 = vpop.f32.mrf.mxu1 }
 0x2cb   :  { %v957_v14 = vmul.f32 1.442695, %v954_v6 }
 0x2cc   :  { %v941_v61 = vpop.f32.mrf.mxu0 }
 0x2cd   :  { %v949_v62 = vadd.f32 %v941_v61, %v885_v57 }
 0x2cf   :  { %v1881_v17 = vadd.f32 %v949_v62, %v841_v55 }
 0x2d0   :  { %v903_v3 = vpop.f32.mrf.mxu2 }
 0x2d1   :  { %v955_v4 = vsub.f32 0.0, %v1881_v17  ;;  %v1089_v8 = vmul.f32 %v1881_v17, %v1881_v17  ;;  %v1079_v12 = vadd.f32 %v1881_v17, %v1883_v1 }
 0x2d2   :  { %v888_v5 = vpop.f32.mrf.mxu1 }
 0x2d3   :  { %v959_v10 = vmul.f32 1.442695, %v955_v4  ;;  %v1091_v15 = vadd.f32 %v1089_v8, %v1088_v11 }
 0x2d4   :  { %v944_v7 = vpop.f32.mrf.mxu0 }
 0x2d5   :  { %v950_v9 = vadd.f32 %v944_v7, %v888_v5  ;;  %1280 = vpow2.f32 %v959_v10 }
 0x2d6   :  { %1282 = vpow2.f32 %v957_v14 }
 0x2d7   :  { %v1893_v13 = vadd.f32 %v950_v9, %v844_v19  ;;  %v1241_v9 = vld [vmem:[%s2007_s28] sm:$0xff] }
 0x2d8   :  { %v906_v22 = vpop.f32.mrf.mxu2 }
 0x2d9   :  { %v956_v16 = vsub.f32 0.0, %v1893_v13  ;;  %v1080_v20 = vadd.f32 %v1079_v12, %v1893_v13  ;;  %v1090_v21 = vmul.f32 %v1893_v13, %v1893_v13 }
 0x2da   :  { %v890_v25 = vpop.f32.mrf.mxu1 }
 0x2db   :  { %v1081_v23 = vrot.slane %v1080_v20, 4  ;;  %v1092_v24 = vadd.f32 %v1091_v15, %v1090_v21  ;;  %v961_v26 = vmul.f32 1.442695, %v956_v16  ;;  %v1281_v33 = vpop.eup %1280 }
 0x2dc   :  { %v946_v29 = vpop.f32.mrf.mxu0  ;;  %v1283_v28 = vpop.eup %1282  ;;  %v964_v47 = vadd.f32 1.0, %v1281_v33 }
 0x2dd   :  { %v1082_v18 = vadd.f32 %v1081_v23, %v1080_v20  ;;  %v1093_v30 = vrot.slane %v1092_v24, 4  ;;  %1284 = vpow2.f32 %v961_v26  ;;  %v963_v48 = vadd.f32 1.0, %v1283_v28  ;;  %v1261_v29 = vld [vmem:[%s1968_s24] ss:$0 sm:$0xff] }
 0x2df   :  { %v1083_v31 = vrot.slane %v1082_v18, 2  ;;  %v1094_v32 = vadd.f32 %v1093_v30, %v1092_v24 }
 0x2e0   :  { %v908_v38 = vpop.f32.mrf.mxu2 }
 0x2e1   :  { %v1084_v35 = vadd.f32 %v1083_v31, %v1082_v18  ;;  %v1095_v36 = vrot.slane %v1094_v32, 2 }
 0x2e3   :  { %v1285_v39 = vpop.eup %1284  ;;  %v1085_v41 = vrot.slane %v1084_v35, 1  ;;  %v1096_v42 = vadd.f32 %v1095_v36, %v1094_v32 }
 0x2e4   :  { %v965_v44 = vadd.f32 1.0, %v1285_v39 }
 0x2e5   :  { %v1086_v45 = vadd.f32 %v1085_v41, %v1084_v35  ;;  %v1097_v46 = vrot.slane %v1096_v42, 1 }
 0x2e6   :  { %1286 = vrcp.f32 %v965_v44 }
 0x2e7   :  { %v1087_v50 = vmul.f32 0.041666668, %v1086_v45  ;;  %v1098_v51 = vadd.f32 %v1097_v46, %v1096_v42  ;;  %1288 = vrcp.f32 %v964_v47 }
 0x2e8   :  { %1290 = vrcp.f32 %v963_v48 }
 0x2e9   :  { %v1099_v52 = vmul.f32 0.041666668, %v1098_v51  ;;  %v1100_v53 = vmul.f32 %v1087_v50, %v1087_v50  ;;  %v1104_v20 = vsub.f32 %v1881_v17, %v1087_v50  ;;  %v1105_v21 = vsub.f32 %v1893_v13, %v1087_v50 }
 0x2ea   :  { %v798_v51 = vadd.f32 %v1874_v49, %v703_v37 }
 0x2eb   :  { %v1101_v54 = vsub.f32 %v1099_v52, %v1100_v53 }
 0x2ec   :  { %v1287_v55 = vpop.eup %1286 }
 0x2ed   :  { %v1289_v57 = vpop.eup %1288  ;;  %v1102_v58 = vmax.f32 %v1101_v54, 0.0  ;;  %v971_v60 = vmul.f32 %v1287_v55, %v906_v22  ;;  %v1001_v61 = vpack.c.bf16 %v1287_v55, %v1287_v55  ;;  %v1260_v22 = vld [vmem:[%s1967_s23] ss:$0 sm:$0xff] }
 0x2ee   :  { %v1291_v62 = vpop.eup %1290  ;;  %v970_v5 = vmul.f32 %v1289_v57, %v903_v3 }
 0x2ef   :  { %v1106_v2 = vadd.f32 1e-05, %v1102_v58  ;;  %v973_v4 = vpack.c.bf16 %v971_v60, %v971_v60  ;;  %v1003_v19 = vsel %vm417_vm0, %v1001_v61, 0  ;;  %v969_v7 = vmul.f32 %v1291_v62, %v1879_v56 }
 0x2f0   :  { %1011 = vmatpush.bf16.msrb.mxu1 %v1003_v19  ;;  %v1000_v8 = vpack.c.bf16 %v1289_v57, %v1291_v62  ;;  %v1103_v56 = vsub.f32 %v1883_v1, %v1087_v50 }
 0x2f1   :  { %1292 = vrsqrt.f32 %v1106_v2  ;;  %v984_v6 = vsel %vm417_vm0, %v973_v4, 0  ;;  %v972_v10 = vpack.c.bf16 %v970_v5, %v969_v7  ;;  %vm1113_vm11 = vweird.f32 %v1106_v2 }
 0x2f2   :  { %992 = vmatpush.bf16.msra.mxu3 %v984_v6 }
 0x2f4   :  { %1012 = vmatpush.bf16.msrb.mxu1 %v1000_v8 }
 0x2f6   :  { %993 = vmatpush.bf16.msra.mxu3 %v972_v10 }
 0x2f7   :  { %v1293_v11 = vpop.eup %1292  ;;  %1236 = vmatmul.msk.bf16.vlgmr.msrb.gmra.mxu1 %vm979_vm9, %v1241_v9 }
 0x2f8   :  { %v1108_v12 = vmul.f32 %v1293_v11, %v1106_v2  ;;  %vm1114_vm10 = vweird.f32 %v1293_v11 }
 0x2f9   :  { %1235 = vmatmul.msk.bf16.vlgmr.msra.gmra.mxu3 %vm979_vm9, %v1241_v9  ;;  %vm1115_vm12 = vmor %vm1113_vm11, %vm1114_vm10 }
 0x2fa   :  { %v1109_v3 = vmul.f32 %v1293_v11, %v1108_v12 }
 0x2fc   :  { %v1110_v14 = vmul.f32 0.5, %v1109_v3 }
 0x2fe   :  { %v1111_v15 = vsub.f32 1.5, %v1110_v14 }
 0x300   :  { %v1112_v16 = vmul.f32 %v1293_v11, %v1111_v15 }
 0x302   :  { %v1116_v23 = vsel %vm1115_vm12, %v1293_v11, %v1112_v16 }
 0x303   :  { %v1117_v24 = vmul.f32 %v1116_v23, %v1103_v56  ;;  %v1118_v25 = vmul.f32 %v1116_v23, %v1104_v20  ;;  %v1119_v26 = vmul.f32 %v1116_v23, %v1105_v21 }
 0x305   :  { %v1125_v18 = vmul.f32 %v1260_v22, %v1119_v26  ;;  %v1123_v30 = vmul.f32 %v1260_v22, %v1117_v24  ;;  %v1124_v1 = vmul.f32 %v1260_v22, %v1118_v25  ;;  %v1262_v24 = vld [vmem:[%s2008_s22] ss:$0 sm:$0xff] }
 0x307   :  { %v1131_v31 = vadd.f32 %v1261_v29, %v1125_v18  ;;  %v1129_v17 = vadd.f32 %v1261_v29, %v1123_v30  ;;  %v1130_v32 = vadd.f32 %v1261_v29, %v1124_v1  ;;  %v1263_v18 = vld [vmem:[%s2009_s21] ss:$0 sm:$0xff] }
 0x309   :  { %v1132_v13 = vmax.f32 %v1129_v17, 0.0  ;;  %v1133_v33 = vmax.f32 %v1130_v32, 0.0  ;;  %v1134_v35 = vmax.f32 %v1131_v31, 0.0 }
 0x30b   :  { %v1135_v36 = vmin.f32 %v1132_v13, 6.0  ;;  %v1136_v38 = vmin.f32 %v1133_v33, 6.0  ;;  %v1137_v28 = vmin.f32 %v1134_v35, 6.0 }
 0x30d   :  { %v1140_v39 = vadd.f32 %v1135_v36, %v1820_v27  ;;  %v1141_v41 = vadd.f32 %v1136_v38, %v1834_v34  ;;  %v1142_v42 = vadd.f32 %v1137_v28, %v1842_v43 }
 0x30f   :  { %1146 = vst [vmem:[#allocation17] sm:$0xff] %v1140_v39 }
 0x310   :  { %1147 = vst [vmem:[#allocation17 + $0x8] sm:$0xff] %v1141_v41 }
 0x311   :  { %1148 = vst [vmem:[#allocation17 + $0x10] sm:$0xff] %v1142_v42 }
 0x374   :  { %v1014_v47 = vpop.f32.mrf.mxu1 }
 0x375   :  { %v1015_v44 = vadd.f32 1e-06, %v1014_v47 }
 0x377   :  { %1294 = vrcp.f32 %v1015_v44 }
 0x37c   :  { %v1016_v27 = vpop.f32.mrf.mxu1  ;;  %v995_v45 = vpop.f32.mrf.mxu3 }
 0x37d   :  { %v1017_v34 = vadd.f32 1e-06, %v1016_v27  ;;  %v1295_v46 = vpop.eup %1294 }
 0x37e   :  { %v1021_v43 = vmul.f32 %v1295_v46, %v995_v45 }
 0x37f   :  { %1296 = vrcp.f32 %v1017_v34 }
 0x380   :  { %v1023_v52 = vadd.f32 %v1021_v43, %v1840_v63 }
 0x382   :  { %v1035_v55 = vmul.f32 %v1023_v52, %v1023_v52 }
 0x384   :  { %v997_v48 = vpop.f32.mrf.mxu3 }
 0x385   :  { %v1297_v50 = vpop.eup %1296 }
 0x386   :  { %v1022_v53 = vmul.f32 %v1297_v50, %v997_v48 }
 0x388   :  { %v1024_v54 = vadd.f32 %v1022_v53, %v798_v51 }
 0x38a   :  { %v1027_v57 = vadd.f32 %v1024_v54, %v1023_v52  ;;  %v1036_v58 = vmul.f32 %v1024_v54, %v1024_v54 }
 0x38c   :  { %v1028_v60 = vrot.slane %v1027_v57, 4  ;;  %v1037_v61 = vadd.f32 %v1036_v58, %v1035_v55 }
 0x38e   :  { %v1029_v62 = vadd.f32 %v1028_v60, %v1027_v57  ;;  %v1038_v2 = vrot.slane %v1037_v61, 4 }
 0x390   :  { %v1030_v4 = vrot.slane %v1029_v62, 2  ;;  %v1039_v19 = vadd.f32 %v1038_v2, %v1037_v61 }
 0x392   :  { %v1031_v5 = vadd.f32 %v1030_v4, %v1029_v62  ;;  %v1040_v6 = vrot.slane %v1039_v19, 2 }
 0x394   :  { %v1032_v7 = vrot.slane %v1031_v5, 1  ;;  %v1041_v8 = vadd.f32 %v1040_v6, %v1039_v19 }
 0x396   :  { %v1033_v40 = vadd.f32 %v1032_v7, %v1031_v5  ;;  %v1042_v9 = vrot.slane %v1041_v8, 1 }
 0x398   :  { %v1034_v37 = vmul.f32 0.0625, %v1033_v40  ;;  %v1043_v49 = vadd.f32 %v1042_v9, %v1041_v8 }
 0x39a   :  { %v1044_v63 = vmul.f32 0.0625, %v1043_v49  ;;  %v1045_v10 = vmul.f32 %v1034_v37, %v1034_v37  ;;  %v1048_v11 = vsub.f32 %v1023_v52, %v1034_v37  ;;  %v1049_v12 = vsub.f32 %v1024_v54, %v1034_v37 }
 0x39c   :  { %v1046_v3 = vsub.f32 %v1044_v63, %v1045_v10 }
 0x39e   :  { %v1047_v14 = vmax.f32 %v1046_v3, 0.0 }
 0x3a0   :  { %v1050_v15 = vadd.f32 1e-05, %v1047_v14 }
 0x3a2   :  { %1298 = vrsqrt.f32 %v1050_v15  ;;  %vm1057_vm14 = vweird.f32 %v1050_v15 }
 0x3a8   :  { %v1299_v16 = vpop.eup %1298 }
 0x3a9   :  { %v1052_v56 = vmul.f32 %v1299_v16, %v1050_v15  ;;  %vm1058_vm13 = vweird.f32 %v1299_v16 }
 0x3aa   :  { %vm1059_vm15 = vmor %vm1057_vm14, %vm1058_vm13 }
 0x3ab   :  { %v1053_v20 = vmul.f32 %v1299_v16, %v1052_v56 }
 0x3ad   :  { %v1054_v21 = vmul.f32 0.5, %v1053_v20 }
 0x3af   :  { %v1055_v22 = vsub.f32 1.5, %v1054_v21 }
 0x3b1   :  { %v1056_v23 = vmul.f32 %v1299_v16, %v1055_v22 }
 0x3b3   :  { %v1060_v25 = vsel %vm1059_vm15, %v1299_v16, %v1056_v23 }
 0x3b4   :  { %v1061_v26 = vmul.f32 %v1060_v25, %v1048_v11  ;;  %v1062_v29 = vmul.f32 %v1060_v25, %v1049_v12 }
 0x3b6   :  { %v1067_v30 = vmul.f32 %v1262_v24, %v1062_v29  ;;  %v1066_v1 = vmul.f32 %v1262_v24, %v1061_v26 }
 0x3b8   :  { %v1071_v31 = vadd.f32 %v1263_v18, %v1066_v1  ;;  %v1072_v17 = vadd.f32 %v1263_v18, %v1067_v30 }
 0x3ba   :  { %v1073_v32 = vmax.f32 %v1071_v31, 0.0  ;;  %v1074_v13 = vmax.f32 %v1072_v17, 0.0 }
 0x3bc   :  { %v1075_v33 = vmin.f32 %v1073_v32, 6.0  ;;  %v1076_v35 = vmin.f32 %v1074_v13, 6.0 }
 0x3be   :  { %v1138_v36 = vadd.f32 %v1075_v33, %v1805_v59  ;;  %v1139_v38 = vadd.f32 %v1076_v35, %v1812_v0 }
 0x3c0   :  { %1144 = vst [vmem:[#allocation15] sm:$0xff] %v1138_v36 }
 0x3c1   :  { %1145 = vst [vmem:[#allocation15 + $0x8] sm:$0xff] %v1139_v38 }
 0x3c2   :  { %1172 = dma.vmem_to_hbm [thread:$0]  %s1165_s30, 256, %s1167_s17, [#allocation16], %s2000_s27, %s2000_s27, %s1999_s26  }
 0x3c3   :  { %1185 = dma.vmem_to_hbm [thread:$0]  %s1178_s4, 384, %s1180_s20, [#allocation16], %s2000_s27, %s2000_s27, %s1999_s26  }
 0x3c4   :  { %1548 = dma.done.wait [#allocation4], 128  }
 0x3c5   :  { %1549 = vsyncadd [#allocation4], 4294967168 }
 0x3c6   :  { %1550 = dma.done.wait [#allocation16], 640  }
 0x3c7   :  { %1551 = vsyncadd [#allocation16], 4294966656 }
 0x3c8   :  { %1198 = vsyncpa [#allocation3], 1 }
 0x3c9   :  { %1199 = vsyncpa [#allocation6], 1 }
 0x3ca   :  { %1200 = vsyncpa [#allocation9], 1 }
 0x3cb   :  { %1201 = vsyncpa [#allocation12], 1 }
 0x3cc   :  { %1202 = vsyncpa [#allocation4], 1 }
 0x3cd   :  { %1203 = vsyncpa [#allocation16], 1 }

</bundles_post_ra>
